<compile_context>
chip_gen: v7x
topology: tpu7x:2x2x1
jax: 0.10.0
libtpu: 0.0.40
codegen_flags: <defaults>
</compile_context>

<pallas_src>
import functools

import jax
import jax.numpy as jnp
from jax.experimental import pallas as pl
from jax.experimental.pallas import tpu as pltpu


def _leaky_relu(v):
    # slope 0.01 < 1  ->  max(v, 0.01*v) == leaky_relu(v); one vmax on the VPU.
    return jnp.maximum(v, 0.01 * v)


# ----------------------------------------------------------------------------
# Fused kernel: branch Linears + Chebyshev recursions + head MLP.
# ----------------------------------------------------------------------------
def ismnet_fused_kernel(coef_ref, x_ref, hl_ref, w_in_ref, b_in_ref,
                        w1_ref, b1_ref, w2_ref, b2_ref, out_ref,
                        *, order_list, K, H):
    # coef_ref: (B*(K+1),)  SMEM   precomputed fW[k] / k**relu(exp_a)
    # x_ref   : (N, F)      VMEM
    # hl_ref  : (maxOrder+1, N, N) full HL stack, indexed statically
    # w_in_ref: (B, F, H)          per-branch lin_in weights
    # b_in_ref: (B, 1, H)          per-branch lin_in biases
    # w1_ref  : (B*H, 16), b1_ref: (1, 16)
    # w2_ref  : (1, 16),   b2_ref: (1, 1)
    # out_ref : (N, 1)
    x = x_ref[...]
    KP1 = K + 1

    # --- B independent Chebyshev chains, statically unrolled -----------------
    branch_acc = []
    for b, order in enumerate(order_list):
        xx = jnp.dot(x, w_in_ref[b], preferred_element_type=jnp.float32) + b_in_ref[b]
        hl = hl_ref[order]                          # static index into full HL
        t_prev = xx                                 # temp[0]
        acc = coef_ref[b * KP1 + 0] * t_prev
        if K >= 1:
            t_cur = jnp.dot(hl, xx, preferred_element_type=jnp.float32)   # temp[1]
            acc = acc + coef_ref[b * KP1 + 1] * t_cur
            for k in range(2, KP1):                 # static unrolled recursion
                t_next = (2.0 * jnp.dot(hl, t_cur, preferred_element_type=jnp.float32)
                          - t_prev)
                acc = acc + coef_ref[b * KP1 + k] * t_next
                t_prev, t_cur = t_cur, t_next
        branch_acc.append(acc)

    # --- head: leaky_relu -> Linear(B*H,16) -> Linear(16,1) -> leaky_relu ----
    # concat(branches) @ W1 == sum_b leaky(branch_b) @ W1[b*H:(b+1)*H, :]
    h = b1_ref[...]                                 # (1, 16), broadcasts over N
    for b in range(len(order_list)):
        xb = _leaky_relu(branch_acc[b])             # F.leaky_relu (0.01 slope)
        h = h + jnp.dot(xb, w1_ref[b * H:(b + 1) * H, :],
                        preferred_element_type=jnp.float32)

    # (N,16)@(16,1) done as a VPU multiply + lane reduction (frees the MXU).
    o = jnp.sum(h * w2_ref[...], axis=-1, keepdims=True) + b2_ref[...]
    out_ref[...] = _leaky_relu(o)                   # F.leaky_relu


# ----------------------------------------------------------------------------
# Wrapper: coefficient precompute (plain JAX) + single pallas_call.
# ----------------------------------------------------------------------------
def ismnet_forward(x, HL, params, *, order_list, K):
    N, F = x.shape
    B = len(order_list)
    H = params["w_in"].shape[-1]

    # c[b, k] = fW[b, k] / k**relu(exp_a[b]),  c[b, 0] = fW[b, 0]
    exp_a = jnp.maximum(params["exp_a"][:, 0, 0], 0.0)                # (B,)
    kk = jnp.arange(K + 1, dtype=jnp.float32)
    denom = jnp.where(kk >= 1.0, kk, 1.0)[None, :] ** exp_a[:, None]  # (B, K+1)
    coef = (params["fw"][:, 0, :] / denom).reshape(B * (K + 1))       # flat SMEM table

    w2_row = params["w2"].reshape(1, 16)                              # (16,1) -> (1,16)

    vmem = pl.BlockSpec(memory_space=pltpu.MemorySpace.VMEM)
    smem = pl.BlockSpec(memory_space=pltpu.MemorySpace.SMEM)

    out = pl.pallas_call(
        functools.partial(ismnet_fused_kernel,
                          order_list=tuple(order_list), K=K, H=H),
        out_shape=jax.ShapeDtypeStruct((N, 1), jnp.float32),
        in_specs=[smem] + [vmem] * 8,
        out_specs=vmem,
    )(coef, x, HL, params["w_in"], params["b_in"],
      params["w1"], params["b1"], w2_row, params["b2"])
    return out


# ----------------------------------------------------------------------------
# Pure-JAX reference (mirrors the PyTorch forward, eval mode).
# ----------------------------------------------------------------------------
def ismnet_reference(x, HL, params, order_list, K):
    outs = []
    for i, order in enumerate(order_list):
        xx = x @ params["w_in"][i] + params["b_in"][i, 0]
        hl = HL[order]
        fw = params["fw"][i, 0]
        exp_a = jnp.maximum(params["exp_a"][i, 0, 0], 0.0)
        temp = [xx, hl @ xx]
        for k in range(2, K + 1):
            temp.append(2.0 * (hl @ temp[k - 1]) - temp[k - 2])
        hidden = fw[0] * temp[0]
        for k in range(1, K + 1):
            hidden = hidden + fw[k] / (float(k) ** exp_a) * temp[k]
        outs.append(hidden)
    xc = jnp.concatenate(outs, axis=1)
    xc = jnp.where(xc >= 0, xc, 0.01 * xc)
    h = xc @ params["w1"] + params["b1"][0]
    o = h @ params["w2"] + params["b2"][0]
    return jnp.where(o >= 0, o, 0.01 * o)


if __name__ == "__main__":
    # Small, consistent shapes.
    N, F, H, K = 64, 16, 32, 4
    alpha = 0.1
    maxOrder, hubOrder = 3, 1
    if maxOrder >= hubOrder:
        order_list = list(range(0, hubOrder)) + list(range(hubOrder + 1, maxOrder + 1))
    else:
        order_list = list(range(0, maxOrder + 1))
    B = len(order_list)                              # 3 branches: orders [0, 2, 3]

    key = jax.random.PRNGKey(0)
    ks = jax.random.split(key, 8)

    x = jax.random.normal(ks[0], (N, F), jnp.float32)
    HL = jax.random.normal(ks[1], (maxOrder + 1, N, N), jnp.float32) * 0.05

    def lin_init(k, fan_in, shape):
        bound = 1.0 / float(fan_in) ** 0.5
        return jax.random.uniform(k, shape, jnp.float32, -bound, bound)

    params = dict(
        w_in=lin_init(ks[2], F, (B, F, H)),
        b_in=lin_init(ks[3], F, (B, 1, H)),
        w1=lin_init(ks[4], B * H, (B * H, 16)),
        b1=lin_init(ks[5], B * H, (1, 16)),
        w2=lin_init(ks[6], 16, (16, 1)),
        b2=lin_init(ks[7], 16, (1, 1)),
    )

    # cheby_prop.reset_parameters(): fW[k] = alpha*(1-alpha)^k, fW[K] = (1-alpha)^K; exp_a = 1
    fw = jnp.array(
        [alpha * (1 - alpha) ** k for k in range(K)] + [(1 - alpha) ** K],
        dtype=jnp.float32,
    )
    params["fw"] = jnp.broadcast_to(fw, (B, 1, K + 1)).astype(jnp.float32)
    params["exp_a"] = jnp.ones((B, 1, 1), jnp.float32)

    out = ismnet_forward(x, HL, params, order_list=order_list, K=K)
    out = jax.block_until_ready(out)

    ref = ismnet_reference(x, HL, params, order_list, K)
    assert out.shape == (N, 1), out.shape
    assert jnp.allclose(out, ref, atol=1e-4, rtol=1e-4), "Pallas result != JAX reference"
    print("KERNEL_OK")
</pallas_src>

<mosaic_0001>
module attributes {stable_mosaic.version = 11 : i64} {
  func.func @ismnet_fused_kernel(%arg0: memref<15xf32, #tpu.memory_space<smem>>, %arg1: memref<64x16xf32, #tpu.memory_space<vmem>>, %arg2: memref<4x64x64xf32, #tpu.memory_space<vmem>>, %arg3: memref<3x16x32xf32, #tpu.memory_space<vmem>>, %arg4: memref<3x1x32xf32, #tpu.memory_space<vmem>>, %arg5: memref<96x16xf32, #tpu.memory_space<vmem>>, %arg6: memref<1x16xf32, #tpu.memory_space<vmem>>, %arg7: memref<1x16xf32, #tpu.memory_space<vmem>>, %arg8: memref<1x1xf32, #tpu.memory_space<vmem>>, %arg9: memref<64x1xf32, #tpu.memory_space<vmem>>) attributes {dimension_semantics = [], scalar_prefetch = 0 : i64, scratch_operands = 0 : i64, tpu.core_type = #tpu.core_type<tc>} {
    %c0 = arith.constant 0 : index
    %c0_0 = arith.constant 0 : index
    %0 = vector.load %arg1[%c0, %c0_0] : memref<64x16xf32, #tpu.memory_space<vmem>>, vector<64x16xf32>
    %c0_1 = arith.constant 0 : index
    %c0_2 = arith.constant 0 : index
    %c0_3 = arith.constant 0 : index
    %1 = vector.load %arg3[%c0_1, %c0_2, %c0_3] : memref<3x16x32xf32, #tpu.memory_space<vmem>>, vector<1x16x32xf32>
    %2 = vector.shape_cast %1 : vector<1x16x32xf32> to vector<16x32xf32>
    %cst = arith.constant dense<0.000000e+00> : vector<64x32xf32>
    %3 = tpu.matmul %0, %2, %cst {dimension_numbers = #tpu.dot_dimension_numbers<[1], [0], [0], [1], [0, 0, 1, 1], [], []>} : vector<64x16xf32>, vector<16x32xf32>, vector<64x32xf32> -> vector<64x32xf32>
    %c0_4 = arith.constant 0 : index
    %c0_5 = arith.constant 0 : index
    %c0_6 = arith.constant 0 : index
    %4 = vector.load %arg4[%c0_4, %c0_5, %c0_6] : memref<3x1x32xf32, #tpu.memory_space<vmem>>, vector<1x1x32xf32>
    %5 = vector.shape_cast %4 : vector<1x1x32xf32> to vector<1x32xf32>
    %6 = vector.broadcast %5 : vector<1x32xf32> to vector<64x32xf32>
    %7 = arith.addf %3, %6 : vector<64x32xf32>
    %c0_7 = arith.constant 0 : index
    %c0_8 = arith.constant 0 : index
    %c0_9 = arith.constant 0 : index
    %8 = vector.load %arg2[%c0_7, %c0_8, %c0_9] : memref<4x64x64xf32, #tpu.memory_space<vmem>>, vector<1x64x64xf32>
    %9 = vector.shape_cast %8 : vector<1x64x64xf32> to vector<64x64xf32>
    %c0_10 = arith.constant 0 : index
    %10 = memref.load %arg0[%c0_10] : memref<15xf32, #tpu.memory_space<smem>>
    %11 = vector.broadcast %10 : f32 to vector<64x32xf32>
    %12 = arith.mulf %11, %7 : vector<64x32xf32>
    %cst_11 = arith.constant dense<0.000000e+00> : vector<64x32xf32>
    %13 = tpu.matmul %9, %7, %cst_11 {dimension_numbers = #tpu.dot_dimension_numbers<[1], [0], [0], [1], [0, 0, 1, 1], [], []>} : vector<64x64xf32>, vector<64x32xf32>, vector<64x32xf32> -> vector<64x32xf32>
    %c1 = arith.constant 1 : index
    %14 = memref.load %arg0[%c1] : memref<15xf32, #tpu.memory_space<smem>>
    %15 = vector.broadcast %14 : f32 to vector<64x32xf32>
    %16 = arith.mulf %15, %13 : vector<64x32xf32>
    %17 = arith.addf %12, %16 : vector<64x32xf32>
    %cst_12 = arith.constant dense<0.000000e+00> : vector<64x32xf32>
    %18 = tpu.matmul %9, %13, %cst_12 {dimension_numbers = #tpu.dot_dimension_numbers<[1], [0], [0], [1], [0, 0, 1, 1], [], []>} : vector<64x64xf32>, vector<64x32xf32>, vector<64x32xf32> -> vector<64x32xf32>
    %cst_13 = arith.constant 2.000000e+00 : f32
    %19 = vector.broadcast %cst_13 : f32 to vector<64x32xf32>
    %20 = arith.mulf %19, %18 : vector<64x32xf32>
    %21 = arith.subf %20, %7 : vector<64x32xf32>
    %c2 = arith.constant 2 : index
    %22 = memref.load %arg0[%c2] : memref<15xf32, #tpu.memory_space<smem>>
    %23 = vector.broadcast %22 : f32 to vector<64x32xf32>
    %24 = arith.mulf %23, %21 : vector<64x32xf32>
    %25 = arith.addf %17, %24 : vector<64x32xf32>
    %cst_14 = arith.constant dense<0.000000e+00> : vector<64x32xf32>
    %26 = tpu.matmul %9, %21, %cst_14 {dimension_numbers = #tpu.dot_dimension_numbers<[1], [0], [0], [1], [0, 0, 1, 1], [], []>} : vector<64x64xf32>, vector<64x32xf32>, vector<64x32xf32> -> vector<64x32xf32>
    %cst_15 = arith.constant 2.000000e+00 : f32
    %27 = vector.broadcast %cst_15 : f32 to vector<64x32xf32>
    %28 = arith.mulf %27, %26 : vector<64x32xf32>
    %29 = arith.subf %28, %13 : vector<64x32xf32>
    %c3 = arith.constant 3 : index
    %30 = memref.load %arg0[%c3] : memref<15xf32, #tpu.memory_space<smem>>
    %31 = vector.broadcast %30 : f32 to vector<64x32xf32>
    %32 = arith.mulf %31, %29 : vector<64x32xf32>
    %33 = arith.addf %25, %32 : vector<64x32xf32>
    %cst_16 = arith.constant dense<0.000000e+00> : vector<64x32xf32>
    %34 = tpu.matmul %9, %29, %cst_16 {dimension_numbers = #tpu.dot_dimension_numbers<[1], [0], [0], [1], [0, 0, 1, 1], [], []>} : vector<64x64xf32>, vector<64x32xf32>, vector<64x32xf32> -> vector<64x32xf32>
    %cst_17 = arith.constant 2.000000e+00 : f32
    %35 = vector.broadcast %cst_17 : f32 to vector<64x32xf32>
    %36 = arith.mulf %35, %34 : vector<64x32xf32>
    %37 = arith.subf %36, %21 : vector<64x32xf32>
    %c4 = arith.constant 4 : index
    %38 = memref.load %arg0[%c4] : memref<15xf32, #tpu.memory_space<smem>>
    %39 = vector.broadcast %38 : f32 to vector<64x32xf32>
    %40 = arith.mulf %39, %37 : vector<64x32xf32>
    %41 = arith.addf %33, %40 : vector<64x32xf32>
    %c1_18 = arith.constant 1 : index
    %c0_19 = arith.constant 0 : index
    %c0_20 = arith.constant 0 : index
    %42 = vector.load %arg3[%c1_18, %c0_19, %c0_20] : memref<3x16x32xf32, #tpu.memory_space<vmem>>, vector<1x16x32xf32>
    %43 = vector.shape_cast %42 : vector<1x16x32xf32> to vector<16x32xf32>
    %cst_21 = arith.constant dense<0.000000e+00> : vector<64x32xf32>
    %44 = tpu.matmul %0, %43, %cst_21 {dimension_numbers = #tpu.dot_dimension_numbers<[1], [0], [0], [1], [0, 0, 1, 1], [], []>} : vector<64x16xf32>, vector<16x32xf32>, vector<64x32xf32> -> vector<64x32xf32>
    %c1_22 = arith.constant 1 : index
    %c0_23 = arith.constant 0 : index
    %c0_24 = arith.constant 0 : index
    %45 = vector.load %arg4[%c1_22, %c0_23, %c0_24] : memref<3x1x32xf32, #tpu.memory_space<vmem>>, vector<1x1x32xf32>
    %46 = vector.shape_cast %45 : vector<1x1x32xf32> to vector<1x32xf32>
    %47 = vector.broadcast %46 : vector<1x32xf32> to vector<64x32xf32>
    %48 = arith.addf %44, %47 : vector<64x32xf32>
    %c2_25 = arith.constant 2 : index
    %c0_26 = arith.constant 0 : index
    %c0_27 = arith.constant 0 : index
    %49 = vector.load %arg2[%c2_25, %c0_26, %c0_27] : memref<4x64x64xf32, #tpu.memory_space<vmem>>, vector<1x64x64xf32>
    %50 = vector.shape_cast %49 : vector<1x64x64xf32> to vector<64x64xf32>
    %c5 = arith.constant 5 : index
    %51 = memref.load %arg0[%c5] : memref<15xf32, #tpu.memory_space<smem>>
    %52 = vector.broadcast %51 : f32 to vector<64x32xf32>
    %53 = arith.mulf %52, %48 : vector<64x32xf32>
    %cst_28 = arith.constant dense<0.000000e+00> : vector<64x32xf32>
    %54 = tpu.matmul %50, %48, %cst_28 {dimension_numbers = #tpu.dot_dimension_numbers<[1], [0], [0], [1], [0, 0, 1, 1], [], []>} : vector<64x64xf32>, vector<64x32xf32>, vector<64x32xf32> -> vector<64x32xf32>
    %c6 = arith.constant 6 : index
    %55 = memref.load %arg0[%c6] : memref<15xf32, #tpu.memory_space<smem>>
    %56 = vector.broadcast %55 : f32 to vector<64x32xf32>
    %57 = arith.mulf %56, %54 : vector<64x32xf32>
    %58 = arith.addf %53, %57 : vector<64x32xf32>
    %cst_29 = arith.constant dense<0.000000e+00> : vector<64x32xf32>
    %59 = tpu.matmul %50, %54, %cst_29 {dimension_numbers = #tpu.dot_dimension_numbers<[1], [0], [0], [1], [0, 0, 1, 1], [], []>} : vector<64x64xf32>, vector<64x32xf32>, vector<64x32xf32> -> vector<64x32xf32>
    %cst_30 = arith.constant 2.000000e+00 : f32
    %60 = vector.broadcast %cst_30 : f32 to vector<64x32xf32>
    %61 = arith.mulf %60, %59 : vector<64x32xf32>
    %62 = arith.subf %61, %48 : vector<64x32xf32>
    %c7 = arith.constant 7 : index
    %63 = memref.load %arg0[%c7] : memref<15xf32, #tpu.memory_space<smem>>
    %64 = vector.broadcast %63 : f32 to vector<64x32xf32>
    %65 = arith.mulf %64, %62 : vector<64x32xf32>
    %66 = arith.addf %58, %65 : vector<64x32xf32>
    %cst_31 = arith.constant dense<0.000000e+00> : vector<64x32xf32>
    %67 = tpu.matmul %50, %62, %cst_31 {dimension_numbers = #tpu.dot_dimension_numbers<[1], [0], [0], [1], [0, 0, 1, 1], [], []>} : vector<64x64xf32>, vector<64x32xf32>, vector<64x32xf32> -> vector<64x32xf32>
    %cst_32 = arith.constant 2.000000e+00 : f32
    %68 = vector.broadcast %cst_32 : f32 to vector<64x32xf32>
    %69 = arith.mulf %68, %67 : vector<64x32xf32>
    %70 = arith.subf %69, %54 : vector<64x32xf32>
    %c8 = arith.constant 8 : index
    %71 = memref.load %arg0[%c8] : memref<15xf32, #tpu.memory_space<smem>>
    %72 = vector.broadcast %71 : f32 to vector<64x32xf32>
    %73 = arith.mulf %72, %70 : vector<64x32xf32>
    %74 = arith.addf %66, %73 : vector<64x32xf32>
    %cst_33 = arith.constant dense<0.000000e+00> : vector<64x32xf32>
    %75 = tpu.matmul %50, %70, %cst_33 {dimension_numbers = #tpu.dot_dimension_numbers<[1], [0], [0], [1], [0, 0, 1, 1], [], []>} : vector<64x64xf32>, vector<64x32xf32>, vector<64x32xf32> -> vector<64x32xf32>
    %cst_34 = arith.constant 2.000000e+00 : f32
    %76 = vector.broadcast %cst_34 : f32 to vector<64x32xf32>
    %77 = arith.mulf %76, %75 : vector<64x32xf32>
    %78 = arith.subf %77, %62 : vector<64x32xf32>
    %c9 = arith.constant 9 : index
    %79 = memref.load %arg0[%c9] : memref<15xf32, #tpu.memory_space<smem>>
    %80 = vector.broadcast %79 : f32 to vector<64x32xf32>
    %81 = arith.mulf %80, %78 : vector<64x32xf32>
    %82 = arith.addf %74, %81 : vector<64x32xf32>
    %c2_35 = arith.constant 2 : index
    %c0_36 = arith.constant 0 : index
    %c0_37 = arith.constant 0 : index
    %83 = vector.load %arg3[%c2_35, %c0_36, %c0_37] : memref<3x16x32xf32, #tpu.memory_space<vmem>>, vector<1x16x32xf32>
    %84 = vector.shape_cast %83 : vector<1x16x32xf32> to vector<16x32xf32>
    %cst_38 = arith.constant dense<0.000000e+00> : vector<64x32xf32>
    %85 = tpu.matmul %0, %84, %cst_38 {dimension_numbers = #tpu.dot_dimension_numbers<[1], [0], [0], [1], [0, 0, 1, 1], [], []>} : vector<64x16xf32>, vector<16x32xf32>, vector<64x32xf32> -> vector<64x32xf32>
    %c2_39 = arith.constant 2 : index
    %c0_40 = arith.constant 0 : index
    %c0_41 = arith.constant 0 : index
    %86 = vector.load %arg4[%c2_39, %c0_40, %c0_41] : memref<3x1x32xf32, #tpu.memory_space<vmem>>, vector<1x1x32xf32>
    %87 = vector.shape_cast %86 : vector<1x1x32xf32> to vector<1x32xf32>
    %88 = vector.broadcast %87 : vector<1x32xf32> to vector<64x32xf32>
    %89 = arith.addf %85, %88 : vector<64x32xf32>
    %c3_42 = arith.constant 3 : index
    %c0_43 = arith.constant 0 : index
    %c0_44 = arith.constant 0 : index
    %90 = vector.load %arg2[%c3_42, %c0_43, %c0_44] : memref<4x64x64xf32, #tpu.memory_space<vmem>>, vector<1x64x64xf32>
    %91 = vector.shape_cast %90 : vector<1x64x64xf32> to vector<64x64xf32>
    %c10 = arith.constant 10 : index
    %92 = memref.load %arg0[%c10] : memref<15xf32, #tpu.memory_space<smem>>
    %93 = vector.broadcast %92 : f32 to vector<64x32xf32>
    %94 = arith.mulf %93, %89 : vector<64x32xf32>
    %cst_45 = arith.constant dense<0.000000e+00> : vector<64x32xf32>
    %95 = tpu.matmul %91, %89, %cst_45 {dimension_numbers = #tpu.dot_dimension_numbers<[1], [0], [0], [1], [0, 0, 1, 1], [], []>} : vector<64x64xf32>, vector<64x32xf32>, vector<64x32xf32> -> vector<64x32xf32>
    %c11 = arith.constant 11 : index
    %96 = memref.load %arg0[%c11] : memref<15xf32, #tpu.memory_space<smem>>
    %97 = vector.broadcast %96 : f32 to vector<64x32xf32>
    %98 = arith.mulf %97, %95 : vector<64x32xf32>
    %99 = arith.addf %94, %98 : vector<64x32xf32>
    %cst_46 = arith.constant dense<0.000000e+00> : vector<64x32xf32>
    %100 = tpu.matmul %91, %95, %cst_46 {dimension_numbers = #tpu.dot_dimension_numbers<[1], [0], [0], [1], [0, 0, 1, 1], [], []>} : vector<64x64xf32>, vector<64x32xf32>, vector<64x32xf32> -> vector<64x32xf32>
    %cst_47 = arith.constant 2.000000e+00 : f32
    %101 = vector.broadcast %cst_47 : f32 to vector<64x32xf32>
    %102 = arith.mulf %101, %100 : vector<64x32xf32>
    %103 = arith.subf %102, %89 : vector<64x32xf32>
    %c12 = arith.constant 12 : index
    %104 = memref.load %arg0[%c12] : memref<15xf32, #tpu.memory_space<smem>>
    %105 = vector.broadcast %104 : f32 to vector<64x32xf32>
    %106 = arith.mulf %105, %103 : vector<64x32xf32>
    %107 = arith.addf %99, %106 : vector<64x32xf32>
    %cst_48 = arith.constant dense<0.000000e+00> : vector<64x32xf32>
    %108 = tpu.matmul %91, %103, %cst_48 {dimension_numbers = #tpu.dot_dimension_numbers<[1], [0], [0], [1], [0, 0, 1, 1], [], []>} : vector<64x64xf32>, vector<64x32xf32>, vector<64x32xf32> -> vector<64x32xf32>
    %cst_49 = arith.constant 2.000000e+00 : f32
    %109 = vector.broadcast %cst_49 : f32 to vector<64x32xf32>
    %110 = arith.mulf %109, %108 : vector<64x32xf32>
    %111 = arith.subf %110, %95 : vector<64x32xf32>
    %c13 = arith.constant 13 : index
    %112 = memref.load %arg0[%c13] : memref<15xf32, #tpu.memory_space<smem>>
    %113 = vector.broadcast %112 : f32 to vector<64x32xf32>
    %114 = arith.mulf %113, %111 : vector<64x32xf32>
    %115 = arith.addf %107, %114 : vector<64x32xf32>
    %cst_50 = arith.constant dense<0.000000e+00> : vector<64x32xf32>
    %116 = tpu.matmul %91, %111, %cst_50 {dimension_numbers = #tpu.dot_dimension_numbers<[1], [0], [0], [1], [0, 0, 1, 1], [], []>} : vector<64x64xf32>, vector<64x32xf32>, vector<64x32xf32> -> vector<64x32xf32>
    %cst_51 = arith.constant 2.000000e+00 : f32
    %117 = vector.broadcast %cst_51 : f32 to vector<64x32xf32>
    %118 = arith.mulf %117, %116 : vector<64x32xf32>
    %119 = arith.subf %118, %103 : vector<64x32xf32>
    %c14 = arith.constant 14 : index
    %120 = memref.load %arg0[%c14] : memref<15xf32, #tpu.memory_space<smem>>
    %121 = vector.broadcast %120 : f32 to vector<64x32xf32>
    %122 = arith.mulf %121, %119 : vector<64x32xf32>
    %123 = arith.addf %115, %122 : vector<64x32xf32>
    %c0_52 = arith.constant 0 : index
    %c0_53 = arith.constant 0 : index
    %124 = vector.load %arg6[%c0_52, %c0_53] : memref<1x16xf32, #tpu.memory_space<vmem>>, vector<1x16xf32>
    %cst_54 = arith.constant 0.00999999977 : f32
    %125 = vector.broadcast %cst_54 : f32 to vector<64x32xf32>
    %126 = arith.mulf %125, %41 : vector<64x32xf32>
    %127 = arith.maximumf %41, %126 : vector<64x32xf32>
    %c0_55 = arith.constant 0 : index
    %c0_56 = arith.constant 0 : index
    %128 = vector.load %arg5[%c0_55, %c0_56] : memref<96x16xf32, #tpu.memory_space<vmem>>, vector<32x16xf32>
    %cst_57 = arith.constant dense<0.000000e+00> : vector<64x16xf32>
    %129 = tpu.matmul %127, %128, %cst_57 {dimension_numbers = #tpu.dot_dimension_numbers<[1], [0], [0], [1], [0, 0, 1, 1], [], []>} : vector<64x32xf32>, vector<32x16xf32>, vector<64x16xf32> -> vector<64x16xf32>
    %130 = vector.broadcast %124 : vector<1x16xf32> to vector<64x16xf32>
    %131 = arith.addf %130, %129 : vector<64x16xf32>
    %cst_58 = arith.constant 0.00999999977 : f32
    %132 = vector.broadcast %cst_58 : f32 to vector<64x32xf32>
    %133 = arith.mulf %132, %82 : vector<64x32xf32>
    %134 = arith.maximumf %82, %133 : vector<64x32xf32>
    %c32 = arith.constant 32 : index
    %c0_59 = arith.constant 0 : index
    %135 = vector.load %arg5[%c32, %c0_59] : memref<96x16xf32, #tpu.memory_space<vmem>>, vector<32x16xf32>
    %cst_60 = arith.constant dense<0.000000e+00> : vector<64x16xf32>
    %136 = tpu.matmul %134, %135, %cst_60 {dimension_numbers = #tpu.dot_dimension_numbers<[1], [0], [0], [1], [0, 0, 1, 1], [], []>} : vector<64x32xf32>, vector<32x16xf32>, vector<64x16xf32> -> vector<64x16xf32>
    %137 = arith.addf %131, %136 : vector<64x16xf32>
    %cst_61 = arith.constant 0.00999999977 : f32
    %138 = vector.broadcast %cst_61 : f32 to vector<64x32xf32>
    %139 = arith.mulf %138, %123 : vector<64x32xf32>
    %140 = arith.maximumf %123, %139 : vector<64x32xf32>
    %c64 = arith.constant 64 : index
    %c0_62 = arith.constant 0 : index
    %141 = vector.load %arg5[%c64, %c0_62] : memref<96x16xf32, #tpu.memory_space<vmem>>, vector<32x16xf32>
    %cst_63 = arith.constant dense<0.000000e+00> : vector<64x16xf32>
    %142 = tpu.matmul %140, %141, %cst_63 {dimension_numbers = #tpu.dot_dimension_numbers<[1], [0], [0], [1], [0, 0, 1, 1], [], []>} : vector<64x32xf32>, vector<32x16xf32>, vector<64x16xf32> -> vector<64x16xf32>
    %143 = arith.addf %137, %142 : vector<64x16xf32>
    %c0_64 = arith.constant 0 : index
    %c0_65 = arith.constant 0 : index
    %144 = vector.load %arg7[%c0_64, %c0_65] : memref<1x16xf32, #tpu.memory_space<vmem>>, vector<1x16xf32>
    %145 = vector.broadcast %144 : vector<1x16xf32> to vector<64x16xf32>
    %146 = arith.mulf %143, %145 : vector<64x16xf32>
    %cst_66 = arith.constant dense<0.000000e+00> : vector<64xf32>
    %147 = vector.multi_reduction <add>, %146, %cst_66 [1] : vector<64x16xf32> to vector<64xf32>
    %148 = vector.shape_cast %147 : vector<64xf32> to vector<64x1xf32>
    %c0_67 = arith.constant 0 : index
    %c0_68 = arith.constant 0 : index
    %149 = vector.load %arg8[%c0_67, %c0_68] : memref<1x1xf32, #tpu.memory_space<vmem>>, vector<1x1xf32>
    %150 = vector.broadcast %149 : vector<1x1xf32> to vector<64x1xf32>
    %151 = arith.addf %148, %150 : vector<64x1xf32>
    %cst_69 = arith.constant 0.00999999977 : f32
    %152 = vector.broadcast %cst_69 : f32 to vector<64x1xf32>
    %153 = arith.mulf %152, %151 : vector<64x1xf32>
    %154 = arith.maximumf %151, %153 : vector<64x1xf32>
    %c0_70 = arith.constant 0 : index
    %c0_71 = arith.constant 0 : index
    %155 = vector.load %arg9[%c0_70, %c0_71] : memref<64x1xf32, #tpu.memory_space<vmem>>, vector<64x1xf32>
    tpu.vector_store %arg9[%c0_70, %c0_71], %154 {strides = array<i32>} : memref<64x1xf32, #tpu.memory_space<vmem>>, vector<64x1xf32>,
    return
  }
}

</mosaic_0001>

<bundles_post_ra>
// kernel: tpu_custom_call.1
= control target key start
LH: loop header
LB: loop body
LE: loop exit
PB: predicated region body
PF: predicated region fallthrough
CT: control target
= control target key end

     0   :  { %s5079_s0 = inlined_call_operand.vmem [shape: f32[15], index: 0, kind: input, shape index: {}]   ;;  %s5080_s1 = inlined_call_operand.vmem [shape: f32[64,16], index: 1, kind: input, shape index: {}]   ;;  %s5081_s2 = inlined_call_operand.hbm [shape: f32[4,64,64], index: 2, kind: input, shape index: {}]   ;;  %s5082_s3 = inlined_call_operand.vmem [shape: f32[3,16,32], index: 3, kind: input, shape index: {}]   ;;  %s5083_s4 = inlined_call_operand.vmem [shape: f32[3,1,32], index: 4, kind: input, shape index: {}]   ;;  %s5084_s5 = inlined_call_operand.vmem [shape: f32[96,16], index: 5, kind: input, shape index: {}]   ;;  %s5085_s6 = inlined_call_operand.vmem [shape: f32[1,16], index: 6, kind: input, shape index: {}]   ;;  %s5086_s7 = inlined_call_operand.vmem [shape: f32[1,16], index: 7, kind: input, shape index: {}]   ;;  %s5087_s8 = inlined_call_operand.<no memory space> [shape: f32[1,1], index: 8, kind: input, shape index: {}]   ;;  %s5088_s9 = inlined_call_operand.vmem [shape: f32[64,1], index: 9, kind: output, shape index: {}]  }
   0x1   :  { %v14_v0 = vstv %s5087_s8 }
   0x2   :  { %15 = vst [vmem:[#allocation2] sm:$0x1] %v14_v0 }
   0x3   :  { %16 = vsyncpa [#allocation5], 0  ;;  %s24_s13 = sshll.u32 %s5079_s0, 4  ;;  %s25_s13 = int_to_ptr.vmem [resolvable:$true] %s24_s13 }
   0x4   :  { %17 = vsyncpa [#allocation4], 0  ;;  %s3885_s14 = scalar_lea.vmem %s25_s13, 16  ;;  %p3890_p1 = scmp.lt.s32.totalorder %s25_s13, %s25_s13 }
   0x5   :  { %p3886_p0 = scmp.ne.s32.totalorder %s25_s13, %s3885_s14  ;;  %p3891_p2 = scmp.lt.s32.totalorder %s3885_s14, %s3885_s14 }
   0x7   :  { %p3892_p3 = por %p3891_p2, %p3890_p1 }
   0x9   :  { %p3893_p4 = pnand %p3892_p3, %p3886_p0 }
   0xb   :  { %3896 = shalt.err (!%p3893_p4)
}
   0xc   :  { %s3923_s15 = smov [#allocation3]   ;;  %s3924_s16 = smov [#allocation6]  }
   0xd   :  { %27 = dma.vmem_to_smem %s25_s13, 16, %s3923_s15, [#allocation5]  }
   0xe   :  { %s35_s17 = sshll.u32 %s3924_s16, 4  ;;  %s3897_s19 = scalar_lea.hbm %s5081_s2, 4096  ;;  %s36_s17 = int_to_ptr.vmem [resolvable:$true] %s35_s17 }
   0xf   :  { %p3898_p5 = scmp.ne.s32.totalorder %s5081_s2, %s3897_s19  ;;  %p3901_p6 = scmp.lt.u32.totalorder %s3897_s19, %s5081_s2 }
  0x11   :  { %p3903_p7 = pnand %p3901_p6, %p3898_p5 }
  0x13   :  { %3906 = shalt.err (!%p3903_p7)
}
  0x14   :  { %s3907_s23 = scalar_lea.vmem %s36_s17, 4096  ;;  %p3912_p9 = scmp.lt.s32.totalorder %s36_s17, %s36_s17 }
  0x15   :  { %p3908_p8 = scmp.ne.s32.totalorder %s36_s17, %s3907_s23  ;;  %p3913_p10 = scmp.lt.s32.totalorder %s3907_s23, %s3907_s23 }
  0x17   :  { %p3914_p11 = por %p3913_p10, %p3912_p9 }
  0x19   :  { %p3915_p12 = pnand %p3914_p11, %p3908_p8 }
  0x1b   :  { %3918 = shalt.err (!%p3915_p12)
}
  0x1c   :  { %s3925_s24 = smov 128   ;;  %s3926_s25 = smov 8  }
  0x1d   :  { %41 = dma.hbm_to_vmem [thread:$0]  %s5081_s2, 4096, %s36_s17, [#allocation4], %s3925_s24, %s3925_s24, %s3926_s25  }
  0x1e   :  { %3919 = dma.done.wait [#allocation5], 16  }
  0x1f   :  { %3920 = vsyncadd [#allocation5], 4294967280 }
  0x20   :  { %3921 = dma.done.wait [#allocation4], 4096  }
  0x21   :  { %3922 = vsyncadd [#allocation4], 4294963200 }
  0x22   :  { %60 = sfence }
  0x23   :  { %v69_v1 = vld [vmem:[%s5082_s3] sm:$0xff]  ;;  %v70_v2 = vld [vmem:[%s5082_s3 + $0x8] sm:$0xff]  ;;  %vm78_vm0 = vcmask 130048   ;;  %v4016_v6 = vld [vmem:[%s5080_s1 + $0x10] sm:$0xff]  ;;  %vm226_vm1 = vcmask 523264   ;;  %s2770_s26 = sld [smem:[#allocation3 + $0x1]] }
  0x24   :  { %v4004_v3 = vld [vmem:[%s5080_s1] sm:$0xff]  ;;  %v3625_v4 = vpack.c.bf16 %v70_v2, %v69_v1  ;;  %v4011_v5 = vld [vmem:[%s5080_s1 + $0x8] sm:$0xff]  ;;  %v4025_v7 = vld [vmem:[%s5080_s1 + $0x18] sm:$0xff]  ;;  %s2779_s27 = sld [smem:[#allocation3 + $0x2]]  ;;  %s2788_s11 = sld [smem:[#allocation3 + $0x3]]  ;;  %vm2210_vm2 = vcmask 261120  }
  0x25   :  { %3185 = vmatprep.mubr.msk.f32.mxu0 %vm78_vm0, %v4004_v3  ;;  %v4030_v8 = vld [vmem:[%s5080_s1 + $0x20] sm:$0xff]  ;;  %v4039_v9 = vld [vmem:[%s5080_s1 + $0x28] sm:$0xff]  ;;  %v4044_v10 = vld [vmem:[%s5080_s1 + $0x30] sm:$0xff]  ;;  %s2797_s13 = sld [smem:[#allocation3 + $0x4]]  ;;  %s2810_s8 = sld [smem:[#allocation3 + $0x5]]  ;;  %vm2738_vm3 = vcmask 7168  }
  0x26   :  { %3626 = vmatprep.subr.bf16.mxu0 %v3625_v4  ;;  %v4053_v11 = vld [vmem:[%s5080_s1 + $0x38] sm:$0xff]  ;;  %v4057_v12 = vld [vmem:[#allocation6] sm:$0xff]  ;;  %v2753_v13 = vld [vmem:[%s5083_s4] ss:$0 sm:$0xff]  ;;  %s216_s1 = sld [smem:[#allocation3]]  ;;  %s2828_s18 = sld [smem:[#allocation3 + $0x7]] }
  0x27   :  { %3628 = vmatpush3.bf16.msra.mxu0 %v3625_v4  ;;  %3269 = vmatprep.mubr.msk.f32.mxu1 %vm226_vm1, %v4057_v12  ;;  %v4090_v34 = vld [vmem:[#allocation6 + $0x8] sm:$0xff]  ;;  %v4092_v35 = vld [vmem:[#allocation6 + $0x10] sm:$0xff]  ;;  %v4098_v36 = vld [vmem:[#allocation6 + $0x18] sm:$0xff]  ;;  %s2837_s19 = sld [smem:[#allocation3 + $0x8]]  ;;  %s2895_s22 = sld [smem:[#allocation3 + $0xe]] }
  0x28   :  { %v4100_v37 = vld [vmem:[#allocation6 + $0x20] sm:$0xff]  ;;  %v4106_v38 = vld [vmem:[#allocation6 + $0x28] sm:$0xff]  ;;  %v4108_v39 = vld [vmem:[#allocation6 + $0x30] sm:$0xff] }
  0x29   :  { %v4114_v40 = vld [vmem:[#allocation6 + $0x38] sm:$0xff]  ;;  %v4122_v42 = vstv %s2770_s26 }
  0x2a   :  { %3186 = vmatmul.mubr.msk.f32.vlgmr.msra.gmra.mrb[0].mxu0 %vm78_vm0, %v4011_v5 }
  0x2b   :  { %3188 = vmatprep.mubr.msk.f32.mxu0 %vm78_vm0, %v4016_v6 }
  0x2c   :  { %v4120_v41 = vstv %s216_s1 }
  0x2e   :  { %3189 = vmatmul.mubr.msk.f32.gmra.mrb[2].mxu0 %vm78_vm0, %v4025_v7 }
  0x2f   :  { %3191 = vmatprep.mubr.msk.f32.mxu0 %vm78_vm0, %v4030_v8 }
  0x32   :  { %3192 = vmatmul.mubr.msk.f32.gmra.mrb[4].mxu0 %vm78_vm0, %v4039_v9 }
  0x33   :  { %3194 = vmatprep.mubr.msk.f32.mxu0 %vm78_vm0, %v4044_v10 }
  0x36   :  { %3195 = vmatmul.mubr.msk.f32.gmra.mrb[6].mxu0 %vm78_vm0, %v4053_v11 }
  0x37   :  { %3213 = vmatprep.mubr.msk.f32.mxu0 %vm226_vm1, %v4057_v12 }
  0xfd   :  { %v3187_v14 = vpop.f32.mrb[0].mxu0 }
  0xfe   :  { %v4066_v15 = vadd.f32 %v3187_v14, %v2753_v13  ;;  %v169_v16 = vpop.f32.mrb[1].mxu0 }
  0xff   :  { %v4068_v17 = vadd.f32 %v2753_v13, %v169_v16  ;;  %v4180_v16 = vstv %s2779_s27 }
 0x100   :  { %v219_v44 = vmul.f32 %v4120_v41, %v4066_v15 }
 0x101   :  { %v3190_v18 = vpop.f32.mrb[2].mxu0  ;;  %v3629_v19 = vpack.c.bf16 %v4066_v15, %v4068_v17  ;;  %v218_v47 = vmul.f32 %v4120_v41, %v4068_v17 }
 0x102   :  { %v4072_v20 = vadd.f32 %v3190_v18, %v2753_v13  ;;  %v179_v21 = vpop.f32.mrb[3].mxu0 }
 0x103   :  { %v4074_v22 = vadd.f32 %v2753_v13, %v179_v21  ;;  %3630 = vmatprep.subr.bf16.mxu0 %v3629_v19 }
 0x104   :  { %3632 = vmatpush3.bf16.msra.mxu0 %v3629_v19  ;;  %v221_v53 = vmul.f32 %v4120_v41, %v4072_v20 }
 0x105   :  { %v3193_v23 = vpop.f32.mrb[4].mxu0  ;;  %v3633_v24 = vpack.c.bf16 %v4072_v20, %v4074_v22  ;;  %v220_v56 = vmul.f32 %v4120_v41, %v4074_v22 }
 0x106   :  { %v4078_v25 = vadd.f32 %v3193_v23, %v2753_v13  ;;  %v189_v26 = vpop.f32.mrb[5].mxu0 }
 0x107   :  { %v4080_v27 = vadd.f32 %v2753_v13, %v189_v26  ;;  %3634 = vmatprep.subr.bf16.mxu0 %v3633_v24 }
 0x108   :  { %3636 = vmatpush3.bf16.msra.mxu0 %v3633_v24 }
 0x109   :  { %v3196_v28 = vpop.f32.mrb[6].mxu0  ;;  %v3637_v29 = vpack.c.bf16 %v4078_v25, %v4080_v27 }
 0x10a   :  { %v4084_v30 = vadd.f32 %v3196_v28, %v2753_v13  ;;  %v199_v31 = vpop.f32.mrb[7].mxu0 }
 0x10b   :  { %v4086_v32 = vadd.f32 %v2753_v13, %v199_v31  ;;  %3638 = vmatprep.subr.bf16.mxu0 %v3637_v29 }
 0x10c   :  { %3640 = vmatpush3.bf16.msra.mxu0 %v3637_v29 }
 0x10d   :  { %v3641_v33 = vpack.c.bf16 %v4084_v30, %v4086_v32 }
 0x10f   :  { %3642 = vmatprep.subr.bf16.mxu0 %v3641_v33 }
 0x110   :  { %3644 = vmatpush3.bf16.msra.mxu0 %v3641_v33 }
 0x113   :  { %3214 = vmatmul.mubr.msk.f32.vlgmr.msra.gmra.mrb[8].mxu0 %vm226_vm1, %v4090_v34 }
 0x114   :  { %3216 = vmatprep.mubr.msk.f32.mxu0 %vm226_vm1, %v4092_v35 }
 0x117   :  { %3217 = vmatmul.mubr.msk.f32.gmra.mrb[10].mxu0 %vm226_vm1, %v4098_v36 }
 0x118   :  { %3219 = vmatprep.mubr.msk.f32.mxu0 %vm226_vm1, %v4100_v37 }
 0x11b   :  { %3220 = vmatmul.mubr.msk.f32.gmra.mrb[12].mxu0 %vm226_vm1, %v4106_v38 }
 0x11c   :  { %3222 = vmatprep.mubr.msk.f32.mxu0 %vm226_vm1, %v4108_v39 }
 0x11f   :  { %3223 = vmatmul.mubr.msk.f32.gmra.mrb[14].mxu0 %vm226_vm1, %v4114_v40 }
 0x120   :  { %3241 = vmatprep.mubr.msk.f32.mxu0 %vm226_vm1, %v4057_v12 }
 0x1e6   :  { %v4124_v43 = vpop.f32.mrb[8].mxu0 }
 0x1e7   :  { %v359_v45 = vmul.f32 %v4124_v43, %v4122_v42  ;;  %v4130_v46 = vpop.f32.mrb[9].mxu0 }
 0x1e8   :  { %v358_v48 = vmul.f32 %v4122_v42, %v4130_v46  ;;  %v3645_v49 = vpack.c.bf16 %v4124_v43, %v4130_v46 }
 0x1e9   :  { %v367_v50 = vadd.f32 %v359_v45, %v219_v44 }
 0x1ea   :  { %v366_v51 = vadd.f32 %v358_v48, %v218_v47  ;;  %v4138_v52 = vpop.f32.mrb[10].mxu0  ;;  %3646 = vmatprep.subr.bf16.mxu0 %v3645_v49 }
 0x1eb   :  { %v361_v54 = vmul.f32 %v4138_v52, %v4122_v42  ;;  %v4144_v55 = vpop.f32.mrb[11].mxu0  ;;  %3648 = vmatpush3.bf16.msra.mxu0 %v3645_v49 }
 0x1ec   :  { %v360_v57 = vmul.f32 %v4122_v42, %v4144_v55  ;;  %v3649_v58 = vpack.c.bf16 %v4138_v52, %v4144_v55 }
 0x1ed   :  { %v369_v59 = vadd.f32 %v361_v54, %v221_v53 }
 0x1ee   :  { %v368_v60 = vadd.f32 %v360_v57, %v220_v56  ;;  %v4152_v61 = vpop.f32.mrb[12].mxu0  ;;  %3650 = vmatprep.subr.bf16.mxu0 %v3649_v58 }
 0x1ef   :  { %v4154_v62 = vpop.f32.mrb[13].mxu0  ;;  %3652 = vmatpush3.bf16.msra.mxu0 %v3649_v58 }
 0x1f0   :  { %v3653_v63 = vpack.c.bf16 %v4152_v61, %v4154_v62 }
 0x1f2   :  { %v4158_v0 = vpop.f32.mrb[14].mxu0  ;;  %3654 = vmatprep.subr.bf16.mxu0 %v3653_v63 }
 0x1f3   :  { %v4160_v1 = vpop.f32.mrb[15].mxu0  ;;  %3656 = vmatpush3.bf16.msra.mxu0 %v3653_v63 }
 0x1f4   :  { %v3657_v2 = vpack.c.bf16 %v4158_v0, %v4160_v1 }
 0x1f6   :  { %3658 = vmatprep.subr.bf16.mxu0 %v3657_v2 }
 0x1f7   :  { %3660 = vmatpush3.bf16.msra.mxu0 %v3657_v2 }
 0x1fa   :  { %3242 = vmatmul.mubr.msk.f32.vlgmr.msra.gmra.mrb[16].mxu0 %vm226_vm1, %v4090_v34 }
 0x1fb   :  { %3244 = vmatprep.mubr.msk.f32.mxu0 %vm226_vm1, %v4092_v35 }
 0x1fe   :  { %3245 = vmatmul.mubr.msk.f32.gmra.mrb[18].mxu0 %vm226_vm1, %v4098_v36 }
 0x1ff   :  { %3247 = vmatprep.mubr.msk.f32.mxu0 %vm226_vm1, %v4100_v37 }
 0x202   :  { %3248 = vmatmul.mubr.msk.f32.gmra.mrb[20].mxu0 %vm226_vm1, %v4106_v38 }
 0x203   :  { %3250 = vmatprep.mubr.msk.f32.mxu0 %vm226_vm1, %v4108_v39 }
 0x206   :  { %3251 = vmatmul.mubr.msk.f32.gmra.mrb[22].mxu0 %vm226_vm1, %v4114_v40 }
 0x207   :  { %3297 = vmatprep.mubr.msk.f32.mxu0 %vm226_vm1, %v4057_v12 }
 0x2cd   :  { %v3243_v4 = vpop.f32.mrb[16].mxu0 }
 0x2ce   :  { %v480_v13 = vmul.f32 2.0, %v3243_v4  ;;  %v440_v14 = vpop.f32.mrb[17].mxu0 }
 0x2cf   :  { %v479_v18 = vmul.f32 2.0, %v440_v14  ;;  %v2799_v14 = vld [vmem:[%s5082_s3 + $0x18] sm:$0xff] }
 0x2d0   :  { %v4183_v19 = vsub.f32 %v480_v13, %v4066_v15 }
 0x2d1   :  { %v4186_v21 = vsub.f32 %v479_v18, %v4068_v17  ;;  %v3246_v23 = vpop.f32.mrb[18].mxu0 }
 0x2d2   :  { %v498_v24 = vmul.f32 %v4180_v16, %v4183_v19  ;;  %v482_v26 = vmul.f32 2.0, %v3246_v23  ;;  %v450_v28 = vpop.f32.mrb[19].mxu0 }
 0x2d3   :  { %v497_v12 = vmul.f32 %v4180_v16, %v4186_v21  ;;  %v481_v29 = vmul.f32 2.0, %v450_v28  ;;  %v3661_v31 = vpack.c.bf16 %v4183_v19, %v4186_v21 }
 0x2d4   :  { %v4195_v33 = vsub.f32 %v482_v26, %v4072_v20  ;;  %v4197_v15 = vadd.f32 %v498_v24, %v367_v50  ;;  %v4266_v24 = vld [vmem:[#allocation6 + $0x80] sm:$0xff] }
 0x2d5   :  { %v4200_v17 = vsub.f32 %v481_v29, %v4074_v22  ;;  %v3249_v44 = vpop.f32.mrb[20].mxu0  ;;  %3662 = vmatprep.subr.bf16.mxu1 %v3661_v31  ;;  %v4202_v45 = vadd.f32 %v497_v12, %v366_v51  ;;  %v4270_v29 = vstv %s2788_s11 }
 0x2d6   :  { %v500_v47 = vmul.f32 %v4180_v16, %v4195_v33  ;;  %v484_v48 = vmul.f32 2.0, %v3249_v44  ;;  %v460_v49 = vpop.f32.mrb[21].mxu0  ;;  %3664 = vmatpush3.bf16.msra.mxu1 %v3661_v31 }
 0x2d7   :  { %v499_v53 = vmul.f32 %v4180_v16, %v4200_v17  ;;  %v483_v20 = vmul.f32 2.0, %v460_v49  ;;  %v3665_v50 = vpack.c.bf16 %v4195_v33, %v4200_v17  ;;  %v223_v49 = vmul.f32 %v4120_v41, %v4078_v25 }
 0x2d8   :  { %v4211_v22 = vsub.f32 %v484_v48, %v4078_v25  ;;  %v4213_v54 = vadd.f32 %v500_v47, %v369_v59  ;;  %v2798_v59 = vld [vmem:[%s5082_s3 + $0x10] sm:$0xff] }
 0x2d9   :  { %v4216_v51 = vsub.f32 %v483_v20, %v4080_v27  ;;  %v3252_v56 = vpop.f32.mrb[22].mxu0  ;;  %3666 = vmatprep.subr.bf16.mxu1 %v3665_v50  ;;  %v4218_v57 = vadd.f32 %v499_v53, %v368_v60  ;;  %v3693_v23 = vpack.c.bf16 %v2799_v14, %v2798_v59  ;;  %v225_v59 = vmul.f32 %v4120_v41, %v4084_v30 }
 0x2da   :  { %v486_v58 = vmul.f32 2.0, %v3252_v56  ;;  %v470_v63 = vpop.f32.mrb[23].mxu0  ;;  %3668 = vmatpush3.bf16.msra.mxu1 %v3665_v50  ;;  %v363_v56 = vmul.f32 %v4152_v61, %v4122_v42  ;;  %v502_v14 = vmul.f32 %v4180_v16, %v4211_v22 }
 0x2db   :  { %v485_v2 = vmul.f32 2.0, %v470_v63  ;;  %v3669_v4 = vpack.c.bf16 %v4211_v22, %v4216_v51 }
 0x2dc   :  { %v4223_v13 = vsub.f32 %v486_v58, %v4084_v30 }
 0x2dd   :  { %v4232_v60 = vsub.f32 %v485_v2, %v4086_v32  ;;  %3670 = vmatprep.subr.bf16.mxu1 %v3669_v4 }
 0x2de   :  { %3672 = vmatpush3.bf16.msra.mxu1 %v3669_v4 }
 0x2df   :  { %v3673_v18 = vpack.c.bf16 %v4223_v13, %v4232_v60 }
 0x2e1   :  { %3674 = vmatprep.subr.bf16.mxu1 %v3673_v18 }
 0x2e2   :  { %3676 = vmatpush3.bf16.msra.mxu1 %v3673_v18 }
 0x2e3   :  { %3694 = vmatprep.subr.bf16.mxu1 %v3693_v23 }
 0x2e5   :  { %3270 = vmatmul.mubr.msk.f32.vlgmr.msra.gmra.mrb[0].mxu1 %vm226_vm1, %v4090_v34 }
 0x2e6   :  { %3272 = vmatprep.mubr.msk.f32.mxu1 %vm226_vm1, %v4092_v35  ;;  %3696 = vmatpush3.bf16.msra.mxu1 %v3693_v23 }
 0x2e9   :  { %3273 = vmatmul.mubr.msk.f32.gmra.mrb[2].mxu1 %vm226_vm1, %v4098_v36 }
 0x2ea   :  { %3275 = vmatprep.mubr.msk.f32.mxu1 %vm226_vm1, %v4100_v37 }
 0x2ed   :  { %3276 = vmatmul.mubr.msk.f32.gmra.mrb[4].mxu1 %vm226_vm1, %v4106_v38 }
 0x2ee   :  { %3278 = vmatprep.mubr.msk.f32.mxu1 %vm226_vm1, %v4108_v39 }
 0x2f1   :  { %3279 = vmatmul.mubr.msk.f32.gmra.mrb[6].mxu1 %vm226_vm1, %v4114_v40 }
 0x2f2   :  { %3313 = vmatprep.mubr.msk.f32.mxu1 %vm78_vm0, %v4004_v3 }
 0x2f5   :  { %3314 = vmatmul.mubr.msk.f32.vlgmr.msra.gmra.mrb[8].mxu1 %vm78_vm0, %v4011_v5 }
 0x2f6   :  { %3316 = vmatprep.mubr.msk.f32.mxu1 %vm78_vm0, %v4016_v6 }
 0x2f9   :  { %3317 = vmatmul.mubr.msk.f32.gmra.mrb[10].mxu1 %vm78_vm0, %v4025_v7 }
 0x2fa   :  { %3319 = vmatprep.mubr.msk.f32.mxu1 %vm78_vm0, %v4030_v8 }
 0x2fd   :  { %3320 = vmatmul.mubr.msk.f32.gmra.mrb[12].mxu1 %vm78_vm0, %v4039_v9 }
 0x2fe   :  { %3322 = vmatprep.mubr.msk.f32.mxu1 %vm78_vm0, %v4044_v10 }
 0x301   :  { %3323 = vmatmul.mubr.msk.f32.gmra.mrb[14].mxu1 %vm78_vm0, %v4053_v11 }
 0x302   :  { %3369 = vmatprep.mubr.msk.f32.mxu1 %vm226_vm1, %v4266_v24 }
 0x3b8   :  { %v3271_v26 = vpop.f32.mrb[0].mxu1 }
 0x3b9   :  { %v619_v28 = vmul.f32 2.0, %v3271_v26  ;;  %v579_v12 = vpop.f32.mrb[1].mxu1  ;;  %v224_v26 = vmul.f32 %v4120_v41, %v4086_v32 }
 0x3ba   :  { %v618_v31 = vmul.f32 2.0, %v579_v12  ;;  %v371_v12 = vadd.f32 %v363_v56, %v223_v49  ;;  %v504_v56 = vmul.f32 %v4180_v16, %v4223_v13 }
 0x3bb   :  { %v627_v44 = vsub.f32 %v619_v28, %v4124_v43  ;;  %v222_v43 = vmul.f32 %v4120_v41, %v4080_v27  ;;  %v364_v41 = vmul.f32 %v4122_v42, %v4160_v1 }
 0x3bc   :  { %v626_v47 = vsub.f32 %v618_v31, %v4130_v46  ;;  %v3274_v48 = vpop.f32.mrb[2].mxu1  ;;  %v362_v46 = vmul.f32 %v4122_v42, %v4154_v62  ;;  %v510_v49 = vadd.f32 %v502_v14, %v371_v12 }
 0x3bd   :  { %v637_v53 = vmul.f32 %v4270_v29, %v627_v44  ;;  %v621_v20 = vmul.f32 2.0, %v3274_v48  ;;  %v589_v50 = vpop.f32.mrb[3].mxu1 }
 0x3be   :  { %v636_v58 = vmul.f32 %v4270_v29, %v626_v47  ;;  %v620_v63 = vmul.f32 2.0, %v589_v50  ;;  %v3677_v2 = vpack.c.bf16 %v627_v44, %v626_v47  ;;  %v370_v47 = vadd.f32 %v362_v46, %v222_v43 }
 0x3bf   :  { %v4285_v4 = vadd.f32 %v637_v53, %v4197_v15  ;;  %v629_v25 = vsub.f32 %v621_v20, %v4138_v52  ;;  %v501_v15 = vmul.f32 %v4180_v16, %v4216_v51 }
 0x3c0   :  { %v4293_v18 = vadd.f32 %v636_v58, %v4202_v45  ;;  %v628_v23 = vsub.f32 %v620_v63, %v4144_v55  ;;  %v3277_v27 = vpop.f32.mrb[4].mxu1  ;;  %3678 = vmatprep.subr.bf16.mxu0 %v3677_v2  ;;  %v365_v55 = vmul.f32 %v4158_v0, %v4122_v42  ;;  %v503_v42 = vmul.f32 %v4180_v16, %v4232_v60 }
 0x3c1   :  { %v639_v52 = vmul.f32 %v4270_v29, %v629_v25  ;;  %v623_v28 = vmul.f32 2.0, %v3277_v27  ;;  %v599_v30 = vpop.f32.mrb[5].mxu1  ;;  %3680 = vmatpush3.bf16.msra.mxu0 %v3677_v2 }
 0x3c2   :  { %v638_v31 = vmul.f32 %v4270_v29, %v628_v23  ;;  %v622_v45 = vmul.f32 2.0, %v599_v30  ;;  %v3681_v44 = vpack.c.bf16 %v629_v25, %v628_v23  ;;  %v373_v46 = vadd.f32 %v365_v55, %v225_v59 }
 0x3c3   :  { %v4305_v48 = vadd.f32 %v639_v52, %v4213_v54  ;;  %v631_v32 = vsub.f32 %v623_v28, %v4152_v61  ;;  %v509_v54 = vadd.f32 %v501_v15, %v370_v47  ;;  %v372_v23 = vadd.f32 %v364_v41, %v224_v26 }
 0x3c4   :  { %v4311_v53 = vadd.f32 %v638_v31, %v4218_v57  ;;  %v630_v20 = vsub.f32 %v622_v45, %v4154_v62  ;;  %v3280_v50 = vpop.f32.mrb[6].mxu1  ;;  %3682 = vmatprep.subr.bf16.mxu0 %v3681_v44  ;;  %v2801_v62 = vld [vmem:[%s5083_s4 + $0x1] ss:$0 sm:$0xff]  ;;  %v512_v52 = vadd.f32 %v504_v56, %v373_v46  ;;  %v774_v46 = vstv %s2797_s13 }
 0x3c5   :  { %v641_v58 = vmul.f32 %v4270_v29, %v631_v32  ;;  %v625_v63 = vmul.f32 2.0, %v3280_v50  ;;  %v609_v2 = vpop.f32.mrb[7].mxu1  ;;  %3684 = vmatpush3.bf16.msra.mxu0 %v3681_v44  ;;  %v511_v31 = vadd.f32 %v503_v42, %v372_v23  ;;  %v4393_v42 = vld [vmem:[#allocation6 + $0xb0] sm:$0xff] }
 0x3c6   :  { %v640_v61 = vmul.f32 %v4270_v29, %v630_v20  ;;  %v624_v57 = vmul.f32 2.0, %v609_v2  ;;  %v3685_v43 = vpack.c.bf16 %v631_v32, %v630_v20 }
 0x3c7   :  { %v4323_v25 = vadd.f32 %v641_v58, %v510_v49  ;;  %v633_v14 = vsub.f32 %v625_v63, %v4158_v0 }
 0x3c8   :  { %v4326_v27 = vadd.f32 %v640_v61, %v509_v54  ;;  %v632_v15 = vsub.f32 %v624_v57, %v4160_v1  ;;  %3686 = vmatprep.subr.bf16.mxu0 %v3685_v43  ;;  %v3315_v16 = vpop.f32.mrb[8].mxu1  ;;  %v4399_v61 = vld [vmem:[#allocation6 + $0xb8] sm:$0xff] }
 0x3c9   :  { %v643_v28 = vmul.f32 %v4270_v29, %v633_v14  ;;  %3688 = vmatpush3.bf16.msra.mxu0 %v3685_v43  ;;  %v4330_v30 = vadd.f32 %v3315_v16, %v2801_v62  ;;  %v868_v12 = vpop.f32.mrb[9].mxu1 }
 0x3ca   :  { %v642_v59 = vmul.f32 %v4270_v29, %v632_v15  ;;  %v4333_v45 = vadd.f32 %v2801_v62, %v868_v12  ;;  %v3689_v0 = vpack.c.bf16 %v633_v14, %v632_v15 }
 0x3cb   :  { %v4335_v26 = vadd.f32 %v643_v28, %v512_v52 }
 0x3cc   :  { %v4337_v44 = vadd.f32 %v642_v59, %v511_v31  ;;  %3690 = vmatprep.subr.bf16.mxu0 %v3689_v0  ;;  %v3318_v1 = vpop.f32.mrb[10].mxu1  ;;  %v3697_v47 = vpack.c.bf16 %v4330_v30, %v4333_v45 }
 0x3cd   :  { %3692 = vmatpush3.bf16.msra.mxu0 %v3689_v0  ;;  %v4341_v55 = vadd.f32 %v3318_v1, %v2801_v62  ;;  %v878_v32 = vpop.f32.mrb[11].mxu1 }
 0x3ce   :  { %v4343_v41 = vadd.f32 %v2801_v62, %v878_v32  ;;  %3698 = vmatprep.subr.bf16.mxu0 %v3697_v47 }
 0x3d0   :  { %3298 = vmatmul.mubr.msk.f32.vlgmr.msra.gmra.mrb[24].mxu0 %vm226_vm1, %v4090_v34  ;;  %v3321_v29 = vpop.f32.mrb[12].mxu1  ;;  %v3701_v49 = vpack.c.bf16 %v4341_v55, %v4343_v41 }
 0x3d1   :  { %v4349_v20 = vadd.f32 %v3321_v29, %v2801_v62  ;;  %3700 = vmatpush3.bf16.msra.mxu0 %v3697_v47  ;;  %v888_v50 = vpop.f32.mrb[13].mxu1  ;;  %3300 = vmatprep.mubr.msk.f32.mxu0 %vm226_vm1, %v4092_v35 }
 0x3d2   :  { %v4353_v56 = vadd.f32 %v2801_v62, %v888_v50  ;;  %3702 = vmatprep.subr.bf16.mxu0 %v3701_v49 }
 0x3d4   :  { %3301 = vmatmul.mubr.msk.f32.gmra.mrb[26].mxu0 %vm226_vm1, %v4098_v36  ;;  %v3324_v58 = vpop.f32.mrb[14].mxu1  ;;  %v3705_v34 = vpack.c.bf16 %v4349_v20, %v4353_v56  ;;  %v4375_v36 = vld [vmem:[#allocation6 + $0x88] sm:$0xff] }
 0x3d5   :  { %v4359_v54 = vadd.f32 %v3324_v58, %v2801_v62  ;;  %3704 = vmatpush3.bf16.msra.mxu0 %v3701_v49  ;;  %v898_v63 = vpop.f32.mrb[15].mxu1  ;;  %3303 = vmatprep.mubr.msk.f32.mxu0 %vm226_vm1, %v4100_v37  ;;  %v4377_v37 = vld [vmem:[#allocation6 + $0x90] sm:$0xff] }
 0x3d6   :  { %v4363_v2 = vadd.f32 %v2801_v62, %v898_v63  ;;  %3706 = vmatprep.subr.bf16.mxu0 %v3705_v34 }
 0x3d8   :  { %3304 = vmatmul.mubr.msk.f32.gmra.mrb[28].mxu0 %vm226_vm1, %v4106_v38  ;;  %v3709_v35 = vpack.c.bf16 %v4359_v54, %v4363_v2  ;;  %v4383_v38 = vld [vmem:[#allocation6 + $0x98] sm:$0xff] }
 0x3d9   :  { %3708 = vmatpush3.bf16.msra.mxu0 %v3705_v34  ;;  %3306 = vmatprep.mubr.msk.f32.mxu0 %vm226_vm1, %v4108_v39  ;;  %v4385_v39 = vld [vmem:[#allocation6 + $0xa0] sm:$0xff] }
 0x3da   :  { %3710 = vmatprep.subr.bf16.mxu0 %v3709_v35 }
 0x3dc   :  { %3307 = vmatmul.mubr.msk.f32.gmra.mrb[30].mxu0 %vm226_vm1, %v4114_v40  ;;  %v4391_v40 = vld [vmem:[#allocation6 + $0xa8] sm:$0xff] }
 0x3dd   :  { %3712 = vmatpush3.bf16.msra.mxu0 %v3709_v35  ;;  %3341 = vmatprep.mubr.msk.f32.mxu0 %vm226_vm1, %v4266_v24 }
 0x3e0   :  { %3342 = vmatmul.mubr.msk.f32.vlgmr.msra.gmra.mrb[32].mxu0 %vm226_vm1, %v4375_v36 }
 0x3e1   :  { %3344 = vmatprep.mubr.msk.f32.mxu0 %vm226_vm1, %v4377_v37 }
 0x3e4   :  { %3345 = vmatmul.mubr.msk.f32.gmra.mrb[34].mxu0 %vm226_vm1, %v4383_v38 }
 0x3e5   :  { %3347 = vmatprep.mubr.msk.f32.mxu0 %vm226_vm1, %v4385_v39 }
 0x3e8   :  { %3348 = vmatmul.mubr.msk.f32.gmra.mrb[36].mxu0 %vm226_vm1, %v4391_v40 }
 0x3e9   :  { %3350 = vmatprep.mubr.msk.f32.mxu0 %vm226_vm1, %v4393_v42 }
 0x3ec   :  { %3351 = vmatmul.mubr.msk.f32.gmra.mrb[38].mxu0 %vm226_vm1, %v4399_v61 }
 0x3ed   :  { %3397 = vmatprep.mubr.msk.f32.mxu0 %vm226_vm1, %v4266_v24 }
 0x4a3   :  { %v3299_v57 = vpop.f32.mrb[24].mxu0 }
 0x4a4   :  { %v758_v43 = vmul.f32 2.0, %v3299_v57  ;;  %v718_v62 = vpop.f32.mrb[25].mxu0 }
 0x4a5   :  { %v757_v14 = vmul.f32 2.0, %v718_v62 }
 0x4a6   :  { %v766_v23 = vsub.f32 %v758_v43, %v4183_v19 }
 0x4a7   :  { %v765_v15 = vsub.f32 %v757_v14, %v4186_v21  ;;  %v3302_v16 = vpop.f32.mrb[26].mxu0 }
 0x4a8   :  { %v776_v52 = vmul.f32 %v774_v46, %v766_v23  ;;  %v760_v28 = vmul.f32 2.0, %v3302_v16  ;;  %v728_v12 = vpop.f32.mrb[27].mxu0 }
 0x4a9   :  { %v775_v31 = vmul.f32 %v774_v46, %v765_v15  ;;  %v759_v59 = vmul.f32 2.0, %v728_v12 }
 0x4aa   :  { %v4408_v0 = vadd.f32 %v776_v52, %v4285_v4  ;;  %v768_v1 = vsub.f32 %v760_v28, %v4195_v33 }
 0x4ab   :  { %v4412_v47 = vadd.f32 %v775_v31, %v4293_v18  ;;  %v767_v32 = vsub.f32 %v759_v59, %v4200_v17  ;;  %v3305_v29 = vpop.f32.mrb[28].mxu0 }
 0x4ac   :  { %v778_v19 = vmul.f32 %v774_v46, %v768_v1  ;;  %v762_v49 = vmul.f32 2.0, %v3305_v29  ;;  %v738_v21 = vpop.f32.mrb[29].mxu0 }
 0x4ad   :  { %v777_v50 = vmul.f32 %v774_v46, %v767_v32  ;;  %v761_v58 = vmul.f32 2.0, %v738_v21 }
 0x4ae   :  { %v4416_v34 = vadd.f32 %v778_v19, %v4305_v48  ;;  %v770_v63 = vsub.f32 %v762_v49, %v4211_v22 }
 0x4af   :  { %v4420_v4 = vadd.f32 %v777_v50, %v4311_v53  ;;  %v769_v33 = vsub.f32 %v761_v58, %v4216_v51  ;;  %v3308_v18 = vpop.f32.mrb[30].mxu0 }
 0x4b0   :  { %v780_v35 = vmul.f32 %v774_v46, %v770_v63  ;;  %v764_v57 = vmul.f32 2.0, %v3308_v18  ;;  %v748_v17 = vpop.f32.mrb[31].mxu0 }
 0x4b1   :  { %v779_v43 = vmul.f32 %v774_v46, %v769_v33  ;;  %v763_v62 = vmul.f32 2.0, %v748_v17 }
 0x4b2   :  { %v4424_v14 = vadd.f32 %v780_v35, %v4323_v25  ;;  %v772_v23 = vsub.f32 %v764_v57, %v4223_v13 }
 0x4b3   :  { %v4428_v48 = vadd.f32 %v779_v43, %v4326_v27  ;;  %v771_v22 = vsub.f32 %v763_v62, %v4232_v60  ;;  %v4431_v53 = vpop.f32.mrb[32].mxu0 }
 0x4b4   :  { %v782_v15 = vmul.f32 %v774_v46, %v772_v23  ;;  %v4433_v51 = vpop.f32.mrb[33].mxu0 }
 0x4b5   :  { %v781_v16 = vmul.f32 %v774_v46, %v771_v22  ;;  %v3713_v52 = vpack.c.bf16 %v4431_v53, %v4433_v51 }
 0x4b6   :  { %v4438_v28 = vadd.f32 %v782_v15, %v4335_v26 }
 0x4b7   :  { %v4441_v25 = vadd.f32 %v781_v16, %v4337_v44  ;;  %v4443_v13 = vpop.f32.mrb[34].mxu0  ;;  %3714 = vmatprep.subr.bf16.mxu1 %v3713_v52 }
 0x4b8   :  { %v4445_v27 = vpop.f32.mrb[35].mxu0  ;;  %3716 = vmatpush3.bf16.msra.mxu1 %v3713_v52 }
 0x4b9   :  { %v3717_v60 = vpack.c.bf16 %v4443_v13, %v4445_v27 }
 0x4bb   :  { %v4449_v12 = vpop.f32.mrb[36].mxu0  ;;  %3718 = vmatprep.subr.bf16.mxu1 %v3717_v60 }
 0x4bc   :  { %v4451_v46 = vpop.f32.mrb[37].mxu0  ;;  %3720 = vmatpush3.bf16.msra.mxu1 %v3717_v60 }
 0x4bd   :  { %v3721_v26 = vpack.c.bf16 %v4449_v12, %v4451_v46 }
 0x4bf   :  { %v4455_v44 = vpop.f32.mrb[38].mxu0  ;;  %3722 = vmatprep.subr.bf16.mxu1 %v3721_v26 }
 0x4c0   :  { %v4457_v31 = vpop.f32.mrb[39].mxu0  ;;  %3724 = vmatpush3.bf16.msra.mxu1 %v3721_v26 }
 0x4c1   :  { %v3725_v59 = vpack.c.bf16 %v4455_v44, %v4457_v31 }
 0x4c3   :  { %3726 = vmatprep.subr.bf16.mxu1 %v3725_v59 }
 0x4c4   :  { %3728 = vmatpush3.bf16.msra.mxu1 %v3725_v59 }
 0x4c7   :  { %3370 = vmatmul.mubr.msk.f32.vlgmr.msra.gmra.mrb[16].mxu1 %vm226_vm1, %v4375_v36 }
 0x4c8   :  { %3372 = vmatprep.mubr.msk.f32.mxu1 %vm226_vm1, %v4377_v37 }
 0x4cb   :  { %3373 = vmatmul.mubr.msk.f32.gmra.mrb[18].mxu1 %vm226_vm1, %v4383_v38 }
 0x4cc   :  { %3375 = vmatprep.mubr.msk.f32.mxu1 %vm226_vm1, %v4385_v39 }
 0x4cf   :  { %3376 = vmatmul.mubr.msk.f32.gmra.mrb[20].mxu1 %vm226_vm1, %v4391_v40 }
 0x4d0   :  { %3378 = vmatprep.mubr.msk.f32.mxu1 %vm226_vm1, %v4393_v42 }
 0x4d3   :  { %3379 = vmatmul.mubr.msk.f32.gmra.mrb[22].mxu1 %vm226_vm1, %v4399_v61 }
 0x4d4   :  { %3425 = vmatprep.mubr.msk.f32.mxu1 %vm226_vm1, %v4266_v24 }
 0x59a   :  { %v3371_v1 = vpop.f32.mrb[16].mxu1 }
 0x59b   :  { %v1179_v32 = vmul.f32 2.0, %v3371_v1  ;;  %v1139_v29 = vpop.f32.mrb[17].mxu1 }
 0x59c   :  { %v1178_v19 = vmul.f32 2.0, %v1139_v29  ;;  %v2848_v29 = vld [vmem:[%s5082_s3 + $0x28] sm:$0xff] }
 0x59d   :  { %v4478_v49 = vsub.f32 %v1179_v32, %v4330_v30  ;;  %v2847_v32 = vld [vmem:[%s5082_s3 + $0x20] sm:$0xff]  ;;  %s2819_s3 = sld [smem:[#allocation3 + $0x6]] }
 0x59e   :  { %v4481_v21 = vsub.f32 %v1178_v19, %v4333_v45  ;;  %v3374_v50 = vpop.f32.mrb[18].mxu1 }
 0x59f   :  { %v1181_v58 = vmul.f32 2.0, %v3374_v50  ;;  %v1149_v63 = vpop.f32.mrb[19].mxu1 }
 0x5a0   :  { %v1180_v33 = vmul.f32 2.0, %v1149_v63  ;;  %v3729_v18 = vpack.c.bf16 %v4478_v49, %v4481_v21 }
 0x5a1   :  { %v4486_v35 = vsub.f32 %v1181_v58, %v4341_v55  ;;  %v3761_v58 = vpack.c.bf16 %v2848_v29, %v2847_v32 }
 0x5a2   :  { %v4489_v24 = vsub.f32 %v1180_v33, %v4343_v41  ;;  %v3377_v57 = vpop.f32.mrb[20].mxu1  ;;  %3730 = vmatprep.subr.bf16.mxu0 %v3729_v18 }
 0x5a3   :  { %v1183_v17 = vmul.f32 2.0, %v3377_v57  ;;  %v1159_v43 = vpop.f32.mrb[21].mxu1  ;;  %3732 = vmatpush3.bf16.msra.mxu0 %v3729_v18 }
 0x5a4   :  { %v1182_v62 = vmul.f32 2.0, %v1159_v43  ;;  %v3733_v23 = vpack.c.bf16 %v4486_v35, %v4489_v24 }
 0x5a5   :  { %v4494_v22 = vsub.f32 %v1183_v17, %v4349_v20 }
 0x5a6   :  { %v4497_v15 = vsub.f32 %v1182_v62, %v4353_v56  ;;  %v3380_v16 = vpop.f32.mrb[22].mxu1  ;;  %3734 = vmatprep.subr.bf16.mxu0 %v3733_v23 }
 0x5a7   :  { %v1185_v52 = vmul.f32 2.0, %v3380_v16  ;;  %v1169_v60 = vpop.f32.mrb[23].mxu1  ;;  %3736 = vmatpush3.bf16.msra.mxu0 %v3733_v23  ;;  %v4572_v16 = vstv %s2837_s19  ;;  %s2886_s19 = sld [smem:[#allocation3 + $0xd]] }
 0x5a8   :  { %v1184_v26 = vmul.f32 2.0, %v1169_v60  ;;  %v3737_v59 = vpack.c.bf16 %v4494_v22, %v4497_v15 }
 0x5a9   :  { %v4502_v1 = vsub.f32 %v1185_v52, %v4359_v54 }
 0x5aa   :  { %v4511_v19 = vsub.f32 %v1184_v26, %v4363_v2  ;;  %3738 = vmatprep.subr.bf16.mxu0 %v3737_v59 }
 0x5ab   :  { %3740 = vmatpush3.bf16.msra.mxu0 %v3737_v59 }
 0x5ac   :  { %v3741_v50 = vpack.c.bf16 %v4502_v1, %v4511_v19 }
 0x5ae   :  { %3742 = vmatprep.subr.bf16.mxu0 %v3741_v50 }
 0x5af   :  { %3744 = vmatpush3.bf16.msra.mxu0 %v3741_v50 }
 0x5b0   :  { %3762 = vmatprep.subr.bf16.mxu0 %v3761_v58 }
 0x5b2   :  { %3398 = vmatmul.mubr.msk.f32.vlgmr.msra.gmra.mrb[40].mxu0 %vm226_vm1, %v4375_v36 }
 0x5b3   :  { %3400 = vmatprep.mubr.msk.f32.mxu0 %vm226_vm1, %v4377_v37  ;;  %3764 = vmatpush3.bf16.msra.mxu0 %v3761_v58 }
 0x5b6   :  { %3401 = vmatmul.mubr.msk.f32.gmra.mrb[42].mxu0 %vm226_vm1, %v4383_v38 }
 0x5b7   :  { %3403 = vmatprep.mubr.msk.f32.mxu0 %vm226_vm1, %v4385_v39 }
 0x5ba   :  { %3404 = vmatmul.mubr.msk.f32.gmra.mrb[44].mxu0 %vm226_vm1, %v4391_v40 }
 0x5bb   :  { %3406 = vmatprep.mubr.msk.f32.mxu0 %vm226_vm1, %v4393_v42 }
 0x5be   :  { %3407 = vmatmul.mubr.msk.f32.gmra.mrb[46].mxu0 %vm226_vm1, %v4399_v61 }
 0x5bf   :  { %3441 = vmatprep.mubr.msk.f32.mxu0 %vm78_vm0, %v4004_v3  ;;  %v4545_v3 = vld [vmem:[#allocation6 + $0xc0] sm:$0xff] }
 0x5c2   :  { %3442 = vmatmul.mubr.msk.f32.vlgmr.msra.gmra.mrb[48].mxu0 %vm78_vm0, %v4011_v5  ;;  %v4549_v5 = vstv %s2819_s3  ;;  %s2868_s3 = sld [smem:[#allocation3 + $0xb]] }
 0x5c3   :  { %3444 = vmatprep.mubr.msk.f32.mxu0 %vm78_vm0, %v4016_v6  ;;  %v917_v6 = vstv %s2810_s8  ;;  %v1060_v18 = vmul.f32 %v4443_v13, %v4549_v5  ;;  %v1062_v32 = vmul.f32 %v4449_v12, %v4549_v5  ;;  %s2859_s8 = sld [smem:[#allocation3 + $0xa]] }
 0x5c4   :  { %v921_v63 = vmul.f32 %v917_v6, %v4341_v55  ;;  %v920_v33 = vmul.f32 %v917_v6, %v4343_v41  ;;  %v923_v43 = vmul.f32 %v917_v6, %v4349_v20  ;;  %v4570_v55 = vmul.f32 %v917_v6, %v4359_v54 }
 0x5c5   :  { %v924_v60 = vmul.f32 %v917_v6, %v4363_v2  ;;  %v1059_v20 = vmul.f32 %v4549_v5, %v4445_v27 }
 0x5c6   :  { %3445 = vmatmul.mubr.msk.f32.gmra.mrb[50].mxu0 %vm78_vm0, %v4025_v7  ;;  %v4551_v7 = vstv %s2828_s18  ;;  %v1068_v59 = vadd.f32 %v1060_v18, %v921_v63  ;;  %s2877_s18 = sld [smem:[#allocation3 + $0xc]] }
 0x5c7   :  { %3447 = vmatprep.mubr.msk.f32.mxu0 %vm78_vm0, %v4030_v8  ;;  %v1058_v8 = vmul.f32 %v4431_v53, %v4549_v5  ;;  %v1197_v57 = vmul.f32 %v4551_v7, %v4478_v49  ;;  %v1199_v58 = vmul.f32 %v4551_v7, %v4486_v35  ;;  %v1067_v18 = vadd.f32 %v1059_v20, %v920_v33 }
 0x5c8   :  { %v1200_v33 = vmul.f32 %v4551_v7, %v4497_v15 }
 0x5ca   :  { %3448 = vmatmul.mubr.msk.f32.gmra.mrb[52].mxu0 %vm78_vm0, %v4039_v9  ;;  %v919_v9 = vmul.f32 %v917_v6, %v4330_v30  ;;  %v922_v30 = vmul.f32 %v917_v6, %v4353_v56 }
 0x5cb   :  { %3450 = vmatprep.mubr.msk.f32.mxu0 %vm78_vm0, %v4044_v10  ;;  %v918_v10 = vmul.f32 %v917_v6, %v4333_v45  ;;  %v1196_v45 = vmul.f32 %v4551_v7, %v4481_v21 }
 0x5cc   :  { %v1066_v41 = vadd.f32 %v1058_v8, %v919_v9 }
 0x5ce   :  { %3451 = vmatmul.mubr.msk.f32.gmra.mrb[54].mxu0 %vm78_vm0, %v4053_v11  ;;  %v1057_v11 = vmul.f32 %v4549_v5, %v4433_v51  ;;  %v1205_v29 = vadd.f32 %v1197_v57, %v1066_v41 }
 0x5cf   :  { %3497 = vmatprep.mubr.msk.f32.mxu0 %vm226_vm1, %v4545_v3 }
 0x5d0   :  { %v1065_v26 = vadd.f32 %v1057_v11, %v918_v10  ;;  %v1198_v10 = vmul.f32 %v4551_v7, %v4489_v24 }
 0x5d2   :  { %v1204_v2 = vadd.f32 %v1196_v45, %v1065_v26  ;;  %v1201_v45 = vmul.f32 %v4551_v7, %v4494_v22  ;;  %v1207_v26 = vadd.f32 %v1199_v58, %v1068_v59  ;;  %v1063_v59 = vmul.f32 %v4549_v5, %v4457_v31 }
 0x685   :  { %v3399_v17 = vpop.f32.mrb[40].mxu0 }
 0x686   :  { %v1318_v62 = vmul.f32 2.0, %v3399_v17  ;;  %v1278_v23 = vpop.f32.mrb[41].mxu0 }
 0x687   :  { %v1317_v52 = vmul.f32 2.0, %v1278_v23 }
 0x688   :  { %v1326_v56 = vsub.f32 %v1318_v62, %v4431_v53  ;;  %v1070_v62 = vadd.f32 %v1062_v32, %v923_v43 }
 0x689   :  { %v1325_v54 = vsub.f32 %v1317_v52, %v4433_v51  ;;  %v3402_v50 = vpop.f32.mrb[42].mxu0  ;;  %v1061_v51 = vmul.f32 %v4549_v5, %v4451_v46 }
 0x68a   :  { %v1336_v8 = vmul.f32 %v4572_v16, %v1326_v56  ;;  %v1320_v6 = vmul.f32 2.0, %v3402_v50  ;;  %v1288_v9 = vpop.f32.mrb[43].mxu0 }
 0x68b   :  { %v1335_v53 = vmul.f32 %v4572_v16, %v1325_v54  ;;  %v1319_v11 = vmul.f32 2.0, %v1288_v9  ;;  %v3745_v63 = vpack.c.bf16 %v1326_v56, %v1325_v54  ;;  %v1069_v50 = vadd.f32 %v1061_v51, %v922_v30 }
 0x68c   :  { %v4589_v57 = vadd.f32 %v1336_v8, %v1205_v29  ;;  %v1328_v17 = vsub.f32 %v1320_v6, %v4443_v13  ;;  %v1206_v13 = vadd.f32 %v1198_v10, %v1067_v18  ;;  %v1209_v6 = vadd.f32 %v1201_v45, %v1070_v62 }
 0x68d   :  { %v4594_v23 = vadd.f32 %v1335_v53, %v1204_v2  ;;  %v1327_v41 = vsub.f32 %v1319_v11, %v4445_v27  ;;  %v3405_v52 = vpop.f32.mrb[44].mxu0  ;;  %3746 = vmatprep.subr.bf16.mxu1 %v3745_v63  ;;  %v1064_v27 = vmul.f32 %v4455_v44, %v4549_v5  ;;  %v1203_v30 = vmul.f32 %v4551_v7, %v4502_v1 }
 0x68e   :  { %v1338_v20 = vmul.f32 %v4572_v16, %v1328_v17  ;;  %v1322_v56 = vmul.f32 2.0, %v3405_v52  ;;  %v1298_v29 = vpop.f32.mrb[45].mxu0  ;;  %3748 = vmatpush3.bf16.msra.mxu1 %v3745_v63  ;;  %v1208_v11 = vadd.f32 %v1200_v33, %v1069_v50  ;;  %v1071_v52 = vadd.f32 %v1063_v59, %v924_v60 }
 0x68f   :  { %v1337_v43 = vmul.f32 %v4572_v16, %v1327_v41  ;;  %v1321_v32 = vmul.f32 2.0, %v1298_v29  ;;  %v3749_v54 = vpack.c.bf16 %v1328_v17, %v1327_v41  ;;  %v1072_v62 = vadd.f32 %v1064_v27, %v4570_v55 }
 0x690   :  { %v4603_v8 = vadd.f32 %v1338_v20, %v1207_v26  ;;  %v1330_v2 = vsub.f32 %v1322_v56, %v4449_v12  ;;  %v1202_v12 = vmul.f32 %v4551_v7, %v4511_v19 }
 0x691   :  { %v4608_v58 = vadd.f32 %v1337_v43, %v1206_v13  ;;  %v1329_v9 = vsub.f32 %v1321_v32, %v4451_v46  ;;  %v3408_v10 = vpop.f32.mrb[46].mxu0  ;;  %3750 = vmatprep.subr.bf16.mxu1 %v3749_v54  ;;  %v2850_v46 = vld [vmem:[%s5083_s4 + $0x2] ss:$0 sm:$0xff]  ;;  %v1211_v20 = vadd.f32 %v1203_v30, %v1072_v62  ;;  %s2846_s4 = sld [smem:[#allocation3 + $0x9]] }
 0x692   :  { %v1340_v53 = vmul.f32 %v4572_v16, %v1330_v2  ;;  %v1324_v63 = vmul.f32 2.0, %v3408_v10  ;;  %v1308_v18 = vpop.f32.mrb[47].mxu0  ;;  %3752 = vmatpush3.bf16.msra.mxu1 %v3749_v54  ;;  %v1210_v43 = vadd.f32 %v1202_v12, %v1071_v52  ;;  %v4691_v12 = vld [vmem:[#allocation6 + $0xf0] sm:$0xff] }
 0x693   :  { %v1339_v5 = vmul.f32 %v4572_v16, %v1329_v9  ;;  %v1323_v51 = vmul.f32 2.0, %v1308_v18  ;;  %v3753_v17 = vpack.c.bf16 %v1330_v2, %v1329_v9 }
 0x694   :  { %v4621_v45 = vadd.f32 %v1340_v53, %v1209_v6  ;;  %v1332_v41 = vsub.f32 %v1324_v63, %v4455_v44 }
 0x695   :  { %v4624_v33 = vadd.f32 %v1339_v5, %v1208_v11  ;;  %v1331_v26 = vsub.f32 %v1323_v51, %v4457_v31  ;;  %3754 = vmatprep.subr.bf16.mxu1 %v3753_v17  ;;  %v3443_v7 = vpop.f32.mrb[48].mxu0  ;;  %v4697_v5 = vld [vmem:[#allocation6 + $0xf8] sm:$0xff] }
 0x696   :  { %v1342_v56 = vmul.f32 %v4572_v16, %v1332_v41  ;;  %3756 = vmatpush3.bf16.msra.mxu1 %v3753_v17  ;;  %v4628_v29 = vadd.f32 %v3443_v7, %v2850_v46  ;;  %v1567_v13 = vpop.f32.mrb[49].mxu0 }
 0x697   :  { %v1341_v55 = vmul.f32 %v4572_v16, %v1331_v26  ;;  %v4631_v32 = vadd.f32 %v2850_v46, %v1567_v13  ;;  %v3757_v44 = vpack.c.bf16 %v1332_v41, %v1331_v26  ;;  %v1473_v62 = vstv %s2846_s4 }
 0x698   :  { %v4633_v60 = vadd.f32 %v1342_v56, %v1211_v20 }
 0x699   :  { %v4635_v54 = vadd.f32 %v1341_v55, %v1210_v43  ;;  %3758 = vmatprep.subr.bf16.mxu1 %v3757_v44  ;;  %v3446_v31 = vpop.f32.mrb[50].mxu0  ;;  %v3765_v50 = vpack.c.bf16 %v4628_v29, %v4631_v32 }
 0x69a   :  { %3760 = vmatpush3.bf16.msra.mxu1 %v3757_v44  ;;  %v4639_v27 = vadd.f32 %v3446_v31, %v2850_v46  ;;  %v1577_v2 = vpop.f32.mrb[51].mxu0 }
 0x69b   :  { %v4641_v59 = vadd.f32 %v2850_v46, %v1577_v2  ;;  %3766 = vmatprep.subr.bf16.mxu1 %v3765_v50 }
 0x69d   :  { %3426 = vmatmul.mubr.msk.f32.vlgmr.msra.gmra.mrb[24].mxu1 %vm226_vm1, %v4375_v36  ;;  %v3449_v16 = vpop.f32.mrb[52].mxu0  ;;  %v3769_v6 = vpack.c.bf16 %v4639_v27, %v4641_v59 }
 0x69e   :  { %v4647_v9 = vadd.f32 %v3449_v16, %v2850_v46  ;;  %3768 = vmatpush3.bf16.msra.mxu1 %v3765_v50  ;;  %v1587_v10 = vpop.f32.mrb[53].mxu0  ;;  %3428 = vmatprep.mubr.msk.f32.mxu1 %vm226_vm1, %v4377_v37 }
 0x69f   :  { %v4651_v30 = vadd.f32 %v2850_v46, %v1587_v10  ;;  %3770 = vmatprep.subr.bf16.mxu1 %v3769_v6 }
 0x6a1   :  { %3429 = vmatmul.mubr.msk.f32.gmra.mrb[26].mxu1 %vm226_vm1, %v4383_v38  ;;  %v3452_v53 = vpop.f32.mrb[54].mxu0  ;;  %v3773_v36 = vpack.c.bf16 %v4647_v9, %v4651_v30  ;;  %v4673_v38 = vld [vmem:[#allocation6 + $0xc8] sm:$0xff] }
 0x6a2   :  { %v4657_v11 = vadd.f32 %v3452_v53, %v2850_v46  ;;  %3772 = vmatpush3.bf16.msra.mxu1 %v3769_v6  ;;  %v1597_v63 = vpop.f32.mrb[55].mxu0  ;;  %3431 = vmatprep.mubr.msk.f32.mxu1 %vm226_vm1, %v4385_v39  ;;  %v4675_v39 = vld [vmem:[#allocation6 + $0xd0] sm:$0xff] }
 0x6a3   :  { %v4661_v18 = vadd.f32 %v2850_v46, %v1597_v63  ;;  %3774 = vmatprep.subr.bf16.mxu1 %v3773_v36 }
 0x6a5   :  { %3432 = vmatmul.mubr.msk.f32.gmra.mrb[28].mxu1 %vm226_vm1, %v4391_v40  ;;  %v3777_v37 = vpack.c.bf16 %v4657_v11, %v4661_v18  ;;  %v4681_v40 = vld [vmem:[#allocation6 + $0xd8] sm:$0xff] }
 0x6a6   :  { %3776 = vmatpush3.bf16.msra.mxu1 %v3773_v36  ;;  %3434 = vmatprep.mubr.msk.f32.mxu1 %vm226_vm1, %v4393_v42  ;;  %v4683_v42 = vld [vmem:[#allocation6 + $0xe0] sm:$0xff] }
 0x6a7   :  { %3778 = vmatprep.subr.bf16.mxu1 %v3777_v37 }
 0x6a9   :  { %3435 = vmatmul.mubr.msk.f32.gmra.mrb[30].mxu1 %vm226_vm1, %v4399_v61  ;;  %v4689_v61 = vld [vmem:[#allocation6 + $0xe8] sm:$0xff] }
 0x6aa   :  { %3780 = vmatpush3.bf16.msra.mxu1 %v3777_v37  ;;  %3469 = vmatprep.mubr.msk.f32.mxu1 %vm226_vm1, %v4545_v3 }
 0x6ad   :  { %3470 = vmatmul.mubr.msk.f32.vlgmr.msra.gmra.mrb[32].mxu1 %vm226_vm1, %v4673_v38 }
 0x6ae   :  { %3472 = vmatprep.mubr.msk.f32.mxu1 %vm226_vm1, %v4675_v39 }
 0x6b1   :  { %3473 = vmatmul.mubr.msk.f32.gmra.mrb[34].mxu1 %vm226_vm1, %v4681_v40 }
 0x6b2   :  { %3475 = vmatprep.mubr.msk.f32.mxu1 %vm226_vm1, %v4683_v42 }
 0x6b5   :  { %3476 = vmatmul.mubr.msk.f32.gmra.mrb[36].mxu1 %vm226_vm1, %v4689_v61 }
 0x6b6   :  { %3478 = vmatprep.mubr.msk.f32.mxu1 %vm226_vm1, %v4691_v12 }
 0x6b9   :  { %3479 = vmatmul.mubr.msk.f32.gmra.mrb[38].mxu1 %vm226_vm1, %v4697_v5 }
 0x6ba   :  { %3525 = vmatprep.mubr.msk.f32.mxu1 %vm226_vm1, %v4545_v3 }
 0x770   :  { %v3427_v51 = vpop.f32.mrb[24].mxu1 }
 0x771   :  { %v1457_v17 = vmul.f32 2.0, %v3427_v51  ;;  %v1417_v46 = vpop.f32.mrb[25].mxu1 }
 0x772   :  { %v1456_v41 = vmul.f32 2.0, %v1417_v46 }
 0x773   :  { %v1465_v52 = vsub.f32 %v1457_v17, %v4478_v49 }
 0x774   :  { %v1464_v26 = vsub.f32 %v1456_v41, %v4481_v21  ;;  %v3430_v7 = vpop.f32.mrb[26].mxu1 }
 0x775   :  { %v1475_v20 = vmul.f32 %v1473_v62, %v1465_v52  ;;  %v1459_v56 = vmul.f32 2.0, %v3430_v7  ;;  %v1427_v13 = vpop.f32.mrb[27].mxu1 }
 0x776   :  { %v1474_v43 = vmul.f32 %v1473_v62, %v1464_v26  ;;  %v1458_v55 = vmul.f32 2.0, %v1427_v13 }
 0x777   :  { %v4706_v44 = vadd.f32 %v1475_v20, %v4589_v57  ;;  %v1467_v31 = vsub.f32 %v1459_v56, %v4486_v35 }
 0x778   :  { %v4710_v50 = vadd.f32 %v1474_v43, %v4594_v23  ;;  %v1466_v2 = vsub.f32 %v1458_v55, %v4489_v24  ;;  %v3433_v16 = vpop.f32.mrb[28].mxu1 }
 0x779   :  { %v1477_v49 = vmul.f32 %v1473_v62, %v1467_v31  ;;  %v1461_v6 = vmul.f32 2.0, %v3433_v16  ;;  %v1437_v21 = vpop.f32.mrb[29].mxu1 }
 0x77a   :  { %v1476_v10 = vmul.f32 %v1473_v62, %v1466_v2  ;;  %v1460_v53 = vmul.f32 2.0, %v1437_v21 }
 0x77b   :  { %v4714_v36 = vadd.f32 %v1477_v49, %v4603_v8  ;;  %v1469_v63 = vsub.f32 %v1461_v6, %v4494_v22 }
 0x77c   :  { %v4718_v57 = vadd.f32 %v1476_v10, %v4608_v58  ;;  %v1468_v35 = vsub.f32 %v1460_v53, %v4497_v15  ;;  %v3436_v23 = vpop.f32.mrb[30].mxu1 }
 0x77d   :  { %v1479_v37 = vmul.f32 %v1473_v62, %v1469_v63  ;;  %v1463_v51 = vmul.f32 2.0, %v3436_v23  ;;  %v1447_v24 = vpop.f32.mrb[31].mxu1 }
 0x77e   :  { %v1478_v17 = vmul.f32 %v1473_v62, %v1468_v35  ;;  %v1462_v46 = vmul.f32 2.0, %v1447_v24 }
 0x77f   :  { %v4722_v41 = vadd.f32 %v1479_v37, %v4621_v45  ;;  %v1471_v52 = vsub.f32 %v1463_v51, %v4502_v1 }
 0x780   :  { %v4726_v8 = vadd.f32 %v1478_v17, %v4624_v33  ;;  %v1470_v22 = vsub.f32 %v1462_v46, %v4511_v19  ;;  %v4729_v58 = vpop.f32.mrb[32].mxu1 }
 0x781   :  { %v1481_v26 = vmul.f32 %v1473_v62, %v1471_v52  ;;  %v4731_v15 = vpop.f32.mrb[33].mxu1 }
 0x782   :  { %v1480_v7 = vmul.f32 %v1473_v62, %v1470_v22  ;;  %v3781_v20 = vpack.c.bf16 %v4729_v58, %v4731_v15 }
 0x783   :  { %v4736_v56 = vadd.f32 %v1481_v26, %v4633_v60 }
 0x784   :  { %v4739_v45 = vadd.f32 %v1480_v7, %v4635_v54  ;;  %v4741_v1 = vpop.f32.mrb[34].mxu1  ;;  %3782 = vmatprep.subr.bf16.mxu0 %v3781_v20 }
 0x785   :  { %v4743_v33 = vpop.f32.mrb[35].mxu1  ;;  %3784 = vmatpush3.bf16.msra.mxu0 %v3781_v20 }
 0x786   :  { %v3785_v19 = vpack.c.bf16 %v4741_v1, %v4743_v33 }
 0x788   :  { %v4747_v13 = vpop.f32.mrb[36].mxu1  ;;  %3786 = vmatprep.subr.bf16.mxu0 %v3785_v19 }
 0x789   :  { %v4749_v62 = vpop.f32.mrb[37].mxu1  ;;  %3788 = vmatpush3.bf16.msra.mxu0 %v3785_v19 }
 0x78a   :  { %v3789_v60 = vpack.c.bf16 %v4747_v13, %v4749_v62 }
 0x78c   :  { %v4753_v54 = vpop.f32.mrb[38].mxu1  ;;  %3790 = vmatprep.subr.bf16.mxu0 %v3789_v60 }
 0x78d   :  { %v4755_v43 = vpop.f32.mrb[39].mxu1  ;;  %3792 = vmatpush3.bf16.msra.mxu0 %v3789_v60 }
 0x78e   :  { %v3793_v55 = vpack.c.bf16 %v4753_v54, %v4755_v43 }
 0x790   :  { %3794 = vmatprep.subr.bf16.mxu0 %v3793_v55 }
 0x791   :  { %3796 = vmatpush3.bf16.msra.mxu0 %v3793_v55 }
 0x794   :  { %3498 = vmatmul.mubr.msk.f32.vlgmr.msra.gmra.mrb[56].mxu0 %vm226_vm1, %v4673_v38 }
 0x795   :  { %3500 = vmatprep.mubr.msk.f32.mxu0 %vm226_vm1, %v4675_v39 }
 0x798   :  { %3501 = vmatmul.mubr.msk.f32.gmra.mrb[58].mxu0 %vm226_vm1, %v4681_v40 }
 0x799   :  { %3503 = vmatprep.mubr.msk.f32.mxu0 %vm226_vm1, %v4683_v42 }
 0x79c   :  { %3504 = vmatmul.mubr.msk.f32.gmra.mrb[60].mxu0 %vm226_vm1, %v4689_v61 }
 0x79d   :  { %3506 = vmatprep.mubr.msk.f32.mxu0 %vm226_vm1, %v4691_v12 }
 0x7a0   :  { %3507 = vmatmul.mubr.msk.f32.gmra.mrb[62].mxu0 %vm226_vm1, %v4697_v5 }
 0x7a1   :  { %3553 = vmatprep.mubr.msk.f32.mxu0 %vm226_vm1, %v4545_v3 }
 0x867   :  { %v3499_v31 = vpop.f32.mrb[56].mxu0 }
 0x868   :  { %v1878_v2 = vmul.f32 2.0, %v3499_v31  ;;  %v1838_v16 = vpop.f32.mrb[57].mxu0 }
 0x869   :  { %v1877_v49 = vmul.f32 2.0, %v1838_v16  ;;  %v2207_v16 = vld [vmem:[%s5084_s5 + $0x8] sm:$0xff] }
 0x86a   :  { %v4776_v6 = vsub.f32 %v1878_v2, %v4628_v29  ;;  %v2206_v2 = vld [vmem:[%s5084_s5] sm:$0xff] }
 0x86b   :  { %v4779_v21 = vsub.f32 %v1877_v49, %v4631_v32  ;;  %v3502_v10 = vpop.f32.mrb[58].mxu0 }
 0x86c   :  { %v1880_v53 = vmul.f32 2.0, %v3502_v10  ;;  %v1848_v63 = vpop.f32.mrb[59].mxu0 }
 0x86d   :  { %v1879_v35 = vmul.f32 2.0, %v1848_v63  ;;  %v3797_v23 = vpack.c.bf16 %v4776_v6, %v4779_v21  ;;  %v2208_v63 = vld [vmem:[%s5084_s5 + $0x10] sm:$0xff] }
 0x86e   :  { %v4784_v37 = vsub.f32 %v1880_v53, %v4639_v27  ;;  %v4813_v53 = vpack.c.bf16 %v2207_v16, %v2206_v2  ;;  %v2197_v2 = vmul.f32 0.01, %v4438_v28 }
 0x86f   :  { %v4787_v3 = vsub.f32 %v1879_v35, %v4641_v59  ;;  %v3505_v51 = vpop.f32.mrb[60].mxu0  ;;  %3798 = vmatprep.subr.bf16.mxu1 %v3797_v23  ;;  %v2209_v35 = vld [vmem:[%s5084_s5 + $0x18] sm:$0xff] }
 0x870   :  { %v1882_v24 = vmul.f32 2.0, %v3505_v51  ;;  %v1858_v17 = vpop.f32.mrb[61].mxu0  ;;  %3800 = vmatpush3.bf16.msra.mxu1 %v3797_v23  ;;  %v4822_v23 = vpack.c.bf16 %v2209_v35, %v2208_v63  ;;  %v2370_v51 = vld [vmem:[%s5084_s5 + $0x20] sm:$0xff]  ;;  %v2355_v63 = vmul.f32 0.01, %v4706_v44  ;;  %v2205_v35 = vmax.f32 %v4438_v28, %v2197_v2 }
 0x871   :  { %v1881_v46 = vmul.f32 2.0, %v1858_v17  ;;  %v3801_v52 = vpack.c.bf16 %v4784_v37, %v4787_v3  ;;  %v2359_v28 = vmul.f32 0.01, %v4722_v41 }
 0x872   :  { %v4792_v22 = vsub.f32 %v1882_v24, %v4647_v9  ;;  %v2371_v24 = vld [vmem:[%s5084_s5 + $0x28] sm:$0xff] }
 0x873   :  { %v4795_v26 = vsub.f32 %v1881_v46, %v4651_v30  ;;  %v3508_v7 = vpop.f32.mrb[62].mxu0  ;;  %3802 = vmatprep.subr.bf16.mxu1 %v3801_v52  ;;  %v3837_v17 = vpack.c.bf16 %v2371_v24, %v2370_v51  ;;  %v2194_v46 = vmul.f32 0.01, %v4428_v48  ;;  %v2356_v51 = vmul.f32 0.01, %v4718_v57 }
 0x874   :  { %v1884_v20 = vmul.f32 2.0, %v3508_v7  ;;  %v1868_v19 = vpop.f32.mrb[63].mxu0  ;;  %3804 = vmatpush3.bf16.msra.mxu1 %v3801_v52  ;;  %v2195_v52 = vmul.f32 0.01, %v4424_v14  ;;  %v2196_v7 = vmul.f32 0.01, %v4441_v25 }
 0x875   :  { %v1883_v60 = vmul.f32 2.0, %v1868_v19  ;;  %v3805_v55 = vpack.c.bf16 %v4792_v22, %v4795_v26  ;;  %v2372_v19 = vld [vmem:[%s5084_s5 + $0x30] sm:$0xff]  ;;  %v2357_v24 = vmul.f32 0.01, %v4714_v36 }
 0x876   :  { %v4800_v31 = vsub.f32 %v1884_v20, %v4657_v11  ;;  %v2202_v20 = vmax.f32 %v4428_v48, %v2194_v46  ;;  %v2354_v48 = vmul.f32 0.01, %v4710_v50  ;;  %v2364_v46 = vmax.f32 %v4718_v57, %v2356_v51 }
 0x877   :  { %v4809_v49 = vsub.f32 %v1883_v60, %v4661_v18  ;;  %3806 = vmatprep.subr.bf16.mxu1 %v3805_v55  ;;  %v2373_v60 = vld [vmem:[%s5084_s5 + $0x38] sm:$0xff]  ;;  %v2367_v57 = vmax.f32 %v4722_v41, %v2359_v28  ;;  %v4895_v41 = vstv %s2868_s3 }
 0x878   :  { %3808 = vmatpush3.bf16.msra.mxu1 %v3805_v55  ;;  %v2203_v55 = vmax.f32 %v4424_v14, %v2195_v52  ;;  %v3841_v16 = vpack.c.bf16 %v2373_v60, %v2372_v19  ;;  %v2362_v14 = vmax.f32 %v4710_v50, %v2354_v48  ;;  %v2365_v50 = vmax.f32 %v4714_v36, %v2357_v24  ;;  %v2528_v19 = vld [vmem:[%s5084_s5 + $0x48] sm:$0xff] }
 0x879   :  { %v3809_v10 = vpack.c.bf16 %v4800_v31, %v4809_v49  ;;  %v2360_v52 = vmul.f32 0.01, %v4739_v45  ;;  %v1756_v48 = vmul.f32 %v4895_v41, %v4731_v15 }
 0x87b   :  { %3810 = vmatprep.subr.bf16.mxu1 %v3809_v10 }
 0x87c   :  { %3812 = vmatpush3.bf16.msra.mxu1 %v3809_v10  ;;  %v2204_v10 = vmax.f32 %v4441_v25, %v2196_v7  ;;  %v2363_v25 = vmax.f32 %v4706_v44, %v2355_v63  ;;  %v2361_v44 = vmul.f32 0.01, %v4736_v56 }
 0x87d   :  { %3853 = vmatprep.subr.bf16.mxu1 %v4813_v53 }
 0x87e   :  { %v2369_v36 = vmax.f32 %v4736_v56, %v2361_v44  ;;  %v1616_v56 = vstv %s2859_s8  ;;  %v1761_v44 = vmul.f32 %v4747_v13, %v4895_v41 }
 0x87f   :  { %3526 = vmatmul.mubr.msk.f32.vlgmr.msra.gmra.mrb[40].mxu1 %vm226_vm1, %v4673_v38  ;;  %v1618_v2 = vmul.f32 %v1616_v56, %v4628_v29  ;;  %v1619_v63 = vmul.f32 %v1616_v56, %v4641_v59  ;;  %v1621_v29 = vmul.f32 %v1616_v56, %v4651_v30  ;;  %v4916_v59 = vstv %s2886_s19 }
 0x880   :  { %3528 = vmatprep.mubr.msk.f32.mxu1 %vm226_vm1, %v4675_v39  ;;  %3855 = vmatpush3.bf16.msra.mxu1 %v4813_v53 }
 0x881   :  { %3854 = vmatprep.subr.bf16.mxu1 %v4822_v23 }
 0x883   :  { %3529 = vmatmul.mubr.msk.f32.gmra.mrb[42].mxu1 %vm226_vm1, %v4681_v40 }
 0x884   :  { %3531 = vmatprep.mubr.msk.f32.mxu1 %vm226_vm1, %v4683_v42  ;;  %3856 = vmatpush3.bf16.msra.mxu1 %v4822_v23 }
 0x885   :  { %3838 = vmatprep.subr.bf16.mxu1 %v3837_v17 }
 0x887   :  { %3532 = vmatmul.mubr.msk.f32.gmra.mrb[44].mxu1 %vm226_vm1, %v4689_v61 }
 0x888   :  { %3534 = vmatprep.mubr.msk.f32.mxu1 %vm226_vm1, %v4691_v12 }
 0x88b   :  { %3535 = vmatmul.mubr.msk.f32.gmra.mrb[46].mxu1 %vm226_vm1, %v4697_v5 }
 0x88c   :  { %3579 = vmatprep.mubr.msk.f32.mxu1 %vm2210_vm2, %v2202_v20  ;;  %v2368_v20 = vmax.f32 %v4739_v45, %v2360_v52  ;;  %v4897_v45 = vstv %s2877_s18 }
 0x88d   :  { %v1896_v51 = vmul.f32 %v4897_v45, %v4776_v6 }
 0x88f   :  { %3580 = vmatmul.mubr.msk.f32.vlgmr.msra.gmra.mrb[48].mxu1 %vm2210_vm2, %v2203_v55  ;;  %v1757_v55 = vmul.f32 %v4729_v58, %v4895_v41 }
 0x890   :  { %3582 = vmatprep.mubr.msk.f32.mxu1 %vm2210_vm2, %v2204_v10  ;;  %3840 = vmatpush3.bf16.msra.mxu1 %v3837_v17  ;;  %v2358_v17 = vmul.f32 0.01, %v4726_v8  ;;  %v1620_v10 = vmul.f32 %v1616_v56, %v4639_v27  ;;  %v1624_v27 = vmul.f32 %v1616_v56, %v4657_v11 }
 0x891   :  { %3842 = vmatprep.subr.bf16.mxu1 %v3841_v16 }
 0x892   :  { %v2366_v7 = vmax.f32 %v4726_v8, %v2358_v17  ;;  %v2527_v8 = vld [vmem:[%s5084_s5 + $0x40] sm:$0xff] }
 0x893   :  { %3583 = vmatmul.mubr.msk.f32.gmra.mrb[50].mxu1 %vm2210_vm2, %v2205_v35  ;;  %v3845_v60 = vpack.c.bf16 %v2528_v19, %v2527_v8  ;;  %v1759_v35 = vmul.f32 %v4741_v1, %v4895_v41 }
 0x894   :  { %3844 = vmatpush3.bf16.msra.mxu1 %v3841_v16  ;;  %3593 = vmatprep.mubr.msk.f32.mxu1 %vm2210_vm2, %v2362_v14  ;;  %v1617_v16 = vmul.f32 %v1616_v56, %v4631_v32  ;;  %v1895_v32 = vmul.f32 %v4897_v45, %v4779_v21 }
 0x895   :  { %3846 = vmatprep.subr.bf16.mxu1 %v3845_v60  ;;  %v1767_v30 = vadd.f32 %v1759_v35, %v1620_v10 }
 0x896   :  { %v1764_v52 = vadd.f32 %v1756_v48, %v1617_v16 }
 0x897   :  { %3594 = vmatmul.mubr.msk.f32.vlgmr.msra.gmra.mrb[52].mxu1 %vm2210_vm2, %v2363_v25  ;;  %v1622_v25 = vmul.f32 %v1616_v56, %v4647_v9 }
 0x898   :  { %3596 = vmatprep.mubr.msk.f32.mxu1 %vm2210_vm2, %v2364_v46  ;;  %3848 = vmatpush3.bf16.msra.mxu1 %v3845_v60  ;;  %v1765_v46 = vadd.f32 %v1757_v55, %v1618_v2 }
 0x899   :  { %v1769_v35 = vadd.f32 %v1761_v44, %v1622_v25 }
 0x89b   :  { %3597 = vmatmul.mubr.msk.f32.gmra.mrb[54].mxu1 %vm2210_vm2, %v2365_v50  ;;  %v1623_v50 = vmul.f32 %v1616_v56, %v4661_v18  ;;  %v1903_v18 = vadd.f32 %v1895_v32, %v1764_v52  ;;  %v1897_v56 = vmul.f32 %v4897_v45, %v4787_v3 }
 0x89c   :  { %3599 = vmatprep.mubr.msk.f32.mxu1 %vm2210_vm2, %v2366_v7  ;;  %v1758_v7 = vmul.f32 %v4895_v41, %v4743_v33 }
 0x89e   :  { %v1766_v16 = vadd.f32 %v1758_v7, %v1619_v63  ;;  %v1899_v63 = vmul.f32 %v4897_v45, %v4795_v26 }
 0x89f   :  { %3600 = vmatmul.mubr.msk.f32.gmra.mrb[48].mxu1 %vm2210_vm2, %v2367_v57  ;;  %v1904_v57 = vadd.f32 %v1896_v51, %v1765_v46  ;;  %v1900_v51 = vmul.f32 %v4897_v45, %v4792_v22 }
 0x8a0   :  { %3602 = vmatprep.mubr.msk.f32.mxu1 %vm2210_vm2, %v2368_v20 }
 0x8a3   :  { %3603 = vmatmul.mubr.msk.f32.gmra.mrb[50].mxu1 %vm2210_vm2, %v2369_v36  ;;  %v1898_v36 = vmul.f32 %v4897_v45, %v4784_v37 }
 0x952   :  { %v3527_v14 = vpop.f32.mrb[40].mxu1 }
 0x953   :  { %v2017_v24 = vmul.f32 2.0, %v3527_v14  ;;  %v1977_v17 = vpop.f32.mrb[41].mxu1 }
 0x954   :  { %v2016_v28 = vmul.f32 2.0, %v1977_v17  ;;  %v1906_v17 = vadd.f32 %v1898_v36, %v1767_v30  ;;  %v1762_v30 = vmul.f32 %v4895_v41, %v4755_v43  ;;  %v1908_v36 = vadd.f32 %v1900_v51, %v1769_v35 }
 0x955   :  { %v2025_v9 = vsub.f32 %v2017_v24, %v4729_v58 }
 0x956   :  { %v2024_v20 = vsub.f32 %v2016_v28, %v4731_v15  ;;  %v3530_v11 = vpop.f32.mrb[42].mxu1  ;;  %v1760_v15 = vmul.f32 %v4895_v41, %v4749_v62 }
 0x957   :  { %v2035_v8 = vmul.f32 %v4916_v59, %v2025_v9  ;;  %v2019_v19 = vmul.f32 2.0, %v3530_v11  ;;  %v1987_v60 = vpop.f32.mrb[43].mxu1 }
 0x958   :  { %v2034_v58 = vmul.f32 %v4916_v59, %v2024_v20  ;;  %v2018_v55 = vmul.f32 2.0, %v1987_v60  ;;  %v3813_v2 = vpack.c.bf16 %v2025_v9, %v2024_v20  ;;  %v1768_v44 = vadd.f32 %v1760_v15, %v1621_v29 }
 0x959   :  { %v4933_v48 = vadd.f32 %v2035_v8, %v1904_v57  ;;  %v2027_v10 = vsub.f32 %v2019_v19, %v4741_v1  ;;  %v1905_v1 = vadd.f32 %v1897_v56, %v1766_v16  ;;  %v1902_v29 = vmul.f32 %v4897_v45, %v4800_v31 }
 0x95a   :  { %v4938_v14 = vadd.f32 %v2034_v58, %v1903_v18  ;;  %v2026_v32 = vsub.f32 %v2018_v55, %v4743_v33  ;;  %v3533_v24 = vpop.f32.mrb[44].mxu1  ;;  %3814 = vmatprep.subr.bf16.mxu0 %v3813_v2  ;;  %v1763_v33 = vmul.f32 %v4753_v54, %v4895_v41  ;;  %v1907_v60 = vadd.f32 %v1899_v63, %v1768_v44 }
 0x95b   :  { %v2037_v46 = vmul.f32 %v4916_v59, %v2027_v10  ;;  %v2021_v28 = vmul.f32 2.0, %v3533_v24  ;;  %v1997_v52 = vpop.f32.mrb[45].mxu1  ;;  %3816 = vmatpush3.bf16.msra.mxu0 %v3813_v2 }
 0x95c   :  { %v2036_v25 = vmul.f32 %v4916_v59, %v2026_v32  ;;  %v2020_v7 = vmul.f32 2.0, %v1997_v52  ;;  %v3817_v9 = vpack.c.bf16 %v2027_v10, %v2026_v32  ;;  %v1771_v16 = vadd.f32 %v1763_v33, %v1624_v27 }
 0x95d   :  { %v4947_v57 = vadd.f32 %v2037_v46, %v1906_v17  ;;  %v2029_v20 = vsub.f32 %v2021_v28, %v4747_v13  ;;  %v1901_v13 = vmul.f32 %v4897_v45, %v4809_v49  ;;  %v1770_v10 = vadd.f32 %v1762_v30, %v1623_v50 }
 0x95e   :  { %v4952_v11 = vadd.f32 %v2036_v25, %v1905_v1  ;;  %v2028_v8 = vsub.f32 %v2020_v7, %v4749_v62  ;;  %v3536_v18 = vpop.f32.mrb[46].mxu1  ;;  %3818 = vmatprep.subr.bf16.mxu0 %v3817_v9  ;;  %v1910_v32 = vadd.f32 %v1902_v29, %v1771_v16 }
 0x95f   :  { %v2039_v19 = vmul.f32 %v4916_v59, %v2029_v20  ;;  %v2023_v56 = vmul.f32 2.0, %v3536_v18  ;;  %v2007_v58 = vpop.f32.mrb[47].mxu1  ;;  %3820 = vmatpush3.bf16.msra.mxu0 %v3817_v9  ;;  %v1909_v45 = vadd.f32 %v1901_v13, %v1770_v10 }
 0x960   :  { %v2038_v41 = vmul.f32 %v4916_v59, %v2028_v8  ;;  %v2022_v55 = vmul.f32 2.0, %v2007_v58  ;;  %v3821_v2 = vpack.c.bf16 %v2029_v20, %v2028_v8 }
 0x961   :  { %v4961_v62 = vadd.f32 %v2039_v19, %v1908_v36  ;;  %v2031_v15 = vsub.f32 %v2023_v56, %v4753_v54  ;;  %v2190_v54 = vmul.f32 0.01, %v4412_v47 }
 0x962   :  { %v4964_v35 = vadd.f32 %v2038_v41, %v1907_v60  ;;  %v2030_v51 = vsub.f32 %v2022_v55, %v4755_v43  ;;  %3822 = vmatprep.subr.bf16.mxu0 %v3821_v2 }
 0x963   :  { %v2041_v24 = vmul.f32 %v4916_v59, %v2031_v15  ;;  %3824 = vmatpush3.bf16.msra.mxu0 %v3821_v2  ;;  %v2198_v43 = vmax.f32 %v4412_v47, %v2190_v54  ;;  %v2529_v47 = vld [vmem:[%s5084_s5 + $0x50] sm:$0xff] }
 0x964   :  { %v2040_v63 = vmul.f32 %v4916_v59, %v2030_v51  ;;  %v3825_v17 = vpack.c.bf16 %v2031_v15, %v2030_v51  ;;  %v2172_v59 = vstv %s2895_s22 }
 0x965   :  { %v4969_v46 = vadd.f32 %v2041_v24, %v1910_v32 }
 0x966   :  { %v4971_v27 = vadd.f32 %v2040_v63, %v1909_v45  ;;  %3826 = vmatprep.subr.bf16.mxu0 %v3825_v17 }
 0x967   :  { %3828 = vmatpush3.bf16.msra.mxu0 %v3825_v17 }
 0x968   :  { %3830 = vmatprep.subr.bf16.mxu0 %v4813_v53 }
 0x96a   :  { %3554 = vmatmul.mubr.msk.f32.vlgmr.msra.gmra.mrb[64].mxu0 %vm226_vm1, %v4673_v38  ;;  %v2191_v38 = vmul.f32 0.01, %v4408_v0 }
 0x96b   :  { %3556 = vmatprep.mubr.msk.f32.mxu0 %vm226_vm1, %v4675_v39  ;;  %3832 = vmatpush3.bf16.msra.mxu0 %v4813_v53  ;;  %v2192_v39 = vmul.f32 0.01, %v4420_v4 }
 0x96c   :  { %3834 = vmatprep.subr.bf16.mxu0 %v4822_v23 }
 0x96e   :  { %3557 = vmatmul.mubr.msk.f32.gmra.mrb[66].mxu0 %vm226_vm1, %v4681_v40  ;;  %v2199_v40 = vmax.f32 %v4408_v0, %v2191_v38  ;;  %v2530_v0 = vld [vmem:[%s5084_s5 + $0x58] sm:$0xff] }
 0x96f   :  { %3559 = vmatprep.mubr.msk.f32.mxu0 %vm226_vm1, %v4683_v42  ;;  %3836 = vmatpush3.bf16.msra.mxu0 %v4822_v23  ;;  %v2193_v42 = vmul.f32 0.01, %v4416_v34 }
 0x972   :  { %3560 = vmatmul.mubr.msk.f32.gmra.mrb[68].mxu0 %vm226_vm1, %v4689_v61  ;;  %v2200_v61 = vmax.f32 %v4420_v4, %v2192_v39 }
 0x973   :  { %3562 = vmatprep.mubr.msk.f32.mxu0 %vm226_vm1, %v4691_v12  ;;  %v2201_v12 = vmax.f32 %v4416_v34, %v2193_v42 }
 0x976   :  { %3563 = vmatmul.mubr.msk.f32.gmra.mrb[70].mxu0 %vm226_vm1, %v4697_v5  ;;  %v3849_v5 = vpack.c.bf16 %v2530_v0, %v2529_v47 }
 0x977   :  { %3573 = vmatprep.mubr.msk.f32.mxu0 %vm2210_vm2, %v2198_v43 }
 0x978   :  { %3850 = vmatprep.subr.bf16.mxu1 %v3849_v5 }
 0x979   :  { %3852 = vmatpush3.bf16.msra.mxu1 %v3849_v5 }
 0x97a   :  { %3574 = vmatmul.mubr.msk.f32.vlgmr.msra.gmra.mrb[72].mxu0 %vm2210_vm2, %v2199_v40 }
 0x97b   :  { %3576 = vmatprep.mubr.msk.f32.mxu0 %vm2210_vm2, %v2200_v61 }
 0x97e   :  { %3577 = vmatmul.mubr.msk.f32.gmra.mrb[74].mxu0 %vm2210_vm2, %v2201_v12 }
 0xa3d   :  { %v3555_v4 = vpop.f32.mrb[64].mxu0 }
 0xa3e   :  { %v2156_v53 = vmul.f32 2.0, %v3555_v4  ;;  %v2116_v23 = vpop.f32.mrb[65].mxu0 }
 0xa3f   :  { %v2155_v50 = vmul.f32 2.0, %v2116_v23 }
 0xa40   :  { %v2164_v34 = vsub.f32 %v2156_v53, %v4776_v6  ;;  %v2921_v53 = vld [vmem:[%s5086_s7] ss:$0 sm:$0xff] }
 0xa41   :  { %v2163_v28 = vsub.f32 %v2155_v50, %v4779_v21  ;;  %v3558_v52 = vpop.f32.mrb[66].mxu0 }
 0xa42   :  { %v2174_v1 = vmul.f32 %v2172_v59, %v2164_v34  ;;  %v2158_v25 = vmul.f32 2.0, %v3558_v52  ;;  %v2126_v7 = vpop.f32.mrb[67].mxu0 }
 0xa43   :  { %v2173_v9 = vmul.f32 %v2172_v59, %v2163_v28  ;;  %v2157_v44 = vmul.f32 2.0, %v2126_v7 }
 0xa44   :  { %v2182_v33 = vadd.f32 %v2174_v1, %v4933_v48  ;;  %v2166_v20 = vsub.f32 %v2158_v25, %v4784_v37 }
 0xa45   :  { %v2181_v30 = vadd.f32 %v2173_v9, %v4938_v14  ;;  %v2165_v36 = vsub.f32 %v2157_v44, %v4787_v3  ;;  %v3561_v8 = vpop.f32.mrb[68].mxu0 }
 0xa46   :  { %v2512_v18 = vmul.f32 0.01, %v2182_v33  ;;  %v2176_v29 = vmul.f32 %v2172_v59, %v2166_v20  ;;  %v2160_v6 = vmul.f32 2.0, %v3561_v8  ;;  %v2136_v19 = vpop.f32.mrb[69].mxu0 }
 0xa47   :  { %v2511_v21 = vmul.f32 0.01, %v2181_v30  ;;  %v2175_v60 = vmul.f32 %v2172_v59, %v2165_v36  ;;  %v2159_v56 = vmul.f32 2.0, %v2136_v19 }
 0xa48   :  { %v2184_v58 = vadd.f32 %v2176_v29, %v4947_v57  ;;  %v2168_v13 = vsub.f32 %v2160_v6, %v4792_v22  ;;  %v2520_v55 = vmax.f32 %v2182_v33, %v2512_v18 }
 0xa49   :  { %v2183_v48 = vadd.f32 %v2175_v60, %v4952_v11  ;;  %v2167_v37 = vsub.f32 %v2159_v56, %v4795_v26  ;;  %v3564_v41 = vpop.f32.mrb[70].mxu0  ;;  %v2519_v14 = vmax.f32 %v2181_v30, %v2511_v21 }
 0xa4a   :  { %v2514_v3 = vmul.f32 0.01, %v2184_v58  ;;  %v2178_v2 = vmul.f32 %v2172_v59, %v2168_v13  ;;  %v2162_v16 = vmul.f32 2.0, %v3564_v41  ;;  %v2146_v15 = vpop.f32.mrb[71].mxu0 }
 0xa4b   :  { %v2513_v10 = vmul.f32 0.01, %v2183_v48  ;;  %v2177_v51 = vmul.f32 %v2172_v59, %v2167_v37  ;;  %v2161_v32 = vmul.f32 2.0, %v2146_v15  ;;  %3613 = vmatprep.mubr.msk.f32.mxu1 %vm2210_vm2, %v2519_v14  ;;  %v2922_v15 = vld [vmem:[#allocation2] ss:$0 sm:$0xff] }
 0xa4c   :  { %v2186_v57 = vadd.f32 %v2178_v2, %v4961_v62  ;;  %v2170_v22 = vsub.f32 %v2162_v16, %v4800_v31  ;;  %3614 = vmatmul.mubr.msk.f32.vlgmr.msra.gmra.mrb[52].mxu1 %vm2210_vm2, %v2520_v55  ;;  %v2522_v38 = vmax.f32 %v2184_v58, %v2514_v3 }
 0xa4d   :  { %v2185_v26 = vadd.f32 %v2177_v51, %v4964_v35  ;;  %v2169_v11 = vsub.f32 %v2161_v32, %v4809_v49  ;;  %v3575_v24 = vpop.f32.mrb[72].mxu0  ;;  %v2521_v45 = vmax.f32 %v2183_v48, %v2513_v10 }
 0xa4e   :  { %v2516_v63 = vmul.f32 0.01, %v2186_v57  ;;  %v2180_v17 = vmul.f32 %v2172_v59, %v2170_v22  ;;  %v2301_v54 = vpop.f32.mrb[73].mxu0 }
 0xa4f   :  { %v2515_v39 = vmul.f32 0.01, %v2185_v26  ;;  %v2179_v43 = vmul.f32 %v2172_v59, %v2169_v11  ;;  %3616 = vmatprep.mubr.msk.f32.mxu1 %vm2210_vm2, %v2521_v45 }
 0xa50   :  { %v2188_v62 = vadd.f32 %v2180_v17, %v4969_v46  ;;  %3617 = vmatmul.mubr.msk.f32.gmra.mrb[54].mxu1 %vm2210_vm2, %v2522_v38  ;;  %v2524_v61 = vmax.f32 %v2186_v57, %v2516_v63  ;;  %v2904_v46 = vld [vmem:[%s5085_s6] ss:$0 sm:$0xff] }
 0xa51   :  { %v2187_v31 = vadd.f32 %v2179_v43, %v4971_v27  ;;  %v3578_v40 = vpop.f32.mrb[74].mxu0  ;;  %v2523_v35 = vmax.f32 %v2185_v26, %v2515_v39  ;;  %v2347_v27 = vadd.f32 %v3575_v24, %v2904_v46  ;;  %v2346_v5 = vadd.f32 %v2904_v46, %v2301_v54 }
 0xa52   :  { %v2518_v42 = vmul.f32 0.01, %v2188_v62  ;;  %v2311_v49 = vpop.f32.mrb[75].mxu0  ;;  %v2349_v34 = vadd.f32 %v3578_v40, %v2904_v46 }
 0xa53   :  { %v2517_v12 = vmul.f32 0.01, %v2187_v31  ;;  %3619 = vmatprep.mubr.msk.f32.mxu1 %vm2210_vm2, %v2523_v35  ;;  %v2348_v52 = vadd.f32 %v2904_v46, %v2311_v49 }
 0xa54   :  { %3620 = vmatmul.mubr.msk.f32.gmra.mrb[48].mxu1 %vm2210_vm2, %v2524_v61  ;;  %v2526_v0 = vmax.f32 %v2188_v62, %v2518_v42 }
 0xa55   :  { %v2525_v47 = vmax.f32 %v2187_v31, %v2517_v12 }
 0xa57   :  { %3622 = vmatprep.mubr.msk.f32.mxu1 %vm2210_vm2, %v2525_v47 }
 0xa58   :  { %3623 = vmatmul.mubr.msk.f32.gmra.mrb[50].mxu1 %vm2210_vm2, %v2526_v0 }
 0xb1f   :  { %v3615_v4 = vpop.f32.mrb[52].mxu1 }
 0xb20   :  { %v3858_v23 = vadd.f32 %v3615_v4, %v2347_v27  ;;  %v2621_v59 = vpop.f32.mrb[53].mxu1 }
 0xb21   :  { %v3860_v50 = vadd.f32 %v2621_v59, %v2346_v5 }
 0xb22   :  { %v2676_v28 = vmul.f32 %v3858_v23, %v2921_v53 }
 0xb23   :  { %v3618_v1 = vpop.f32.mrb[54].mxu1  ;;  %v2675_v44 = vmul.f32 %v3860_v50, %v2921_v53 }
 0xb24   :  { %v3862_v25 = vadd.f32 %v3618_v1, %v2349_v34  ;;  %v2631_v7 = vpop.f32.mrb[55].mxu1  ;;  %v2686_v9 = vsel %vm78_vm0, %v2676_v28, 0.0 }
 0xb25   :  { %v3864_v33 = vadd.f32 %v2631_v7, %v2348_v52  ;;  %2687 = vadd.xlane.f32.xlu0 %v2686_v9  ;;  %v2683_v18 = vsel %vm78_vm0, %v2675_v44, 0.0 }
 0xb26   :  { %v2678_v20 = vmul.f32 %v3862_v25, %v2921_v53 }
 0xb27   :  { %v3621_v30 = vpop.f32.mrb[48].mxu1  ;;  %v2677_v6 = vmul.f32 %v3864_v33, %v2921_v53 }
 0xb28   :  { %v3865_v36 = vadd.f32 %v3621_v30, %v2904_v46  ;;  %v2641_v8 = vpop.f32.mrb[49].mxu1  ;;  %v2692_v29 = vsel %vm78_vm0, %v2678_v20, 0.0 }
 0xb29   :  { %v3866_v19 = vadd.f32 %v2904_v46, %v2641_v8  ;;  %2684 = vadd.xlane.f32.xlu0 %v2683_v18  ;;  %2693 = vadd.xlane.f32.xlu1 %v2692_v29  ;;  %v2689_v13 = vsel %vm78_vm0, %v2677_v6, 0.0 }
 0xb2a   :  { %v2680_v48 = vmul.f32 %v3865_v36, %v2921_v53 }
 0xb2b   :  { %v3624_v21 = vpop.f32.mrb[50].mxu1  ;;  %v2679_v60 = vmul.f32 %v3866_v19, %v2921_v53 }
 0xb2c   :  { %v3867_v56 = vadd.f32 %v3624_v21, %v2904_v46  ;;  %v2651_v58 = vpop.f32.mrb[51].mxu1  ;;  %v2698_v55 = vsel %vm78_vm0, %v2680_v48, 0.0 }
 0xb2d   :  { %v3868_v37 = vadd.f32 %v2904_v46, %v2651_v58  ;;  %2690 = vadd.xlane.f32.xlu1 %v2689_v13  ;;  %v2695_v41 = vsel %vm78_vm0, %v2679_v60, 0.0 }
 0xb2e   :  { %2696 = vadd.xlane.f32.xlu0 %v2695_v41  ;;  %v2682_v3 = vmul.f32 %v3867_v56, %v2921_v53 }
 0xb2f   :  { %v2681_v14 = vmul.f32 %v3868_v37, %v2921_v53 }
 0xb30   :  { %v2704_v16 = vsel %vm78_vm0, %v2682_v3, 0.0 }
 0xb31   :  { %2699 = vadd.xlane.f32.xlu1 %v2698_v55  ;;  %v2701_v2 = vsel %vm78_vm0, %v2681_v14, 0.0 }
 0xb32   :  { %2702 = vadd.xlane.f32.xlu0 %v2701_v2 }
 0xb35   :  { %2705 = vadd.xlane.f32.xlu1 %v2704_v16 }
 0xbb2   :  { %v2688_v10 = vpop.xlane.xlu0 %2687 }
 0xbb3   :  { %v2715_v51 = vadd.f32 %v2922_v15, %v2688_v10 }
 0xbb5   :  { %v2723_v32 = vmul.f32 0.01, %v2715_v51 }
 0xbb6   :  { %v2685_v57 = vpop.xlane.xlu0 %2684  ;;  %v2694_v22 = vpop.xlane.xlu1 %2693 }
 0xbb7   :  { %v2731_v26 = vmax.f32 %v2715_v51, %v2723_v32  ;;  %v2714_v11 = vadd.f32 %v2922_v15, %v2685_v57  ;;  %v2717_v24 = vadd.f32 %v2922_v15, %v2694_v22 }
 0xbb9   :  { %2740 = vst.msk [vmem:[%s5088_s9 + $0x8] sm:$0xff] %vm2738_vm3, %v2731_v26  ;;  %v2722_v45 = vmul.f32 0.01, %v2714_v11  ;;  %v2725_v63 = vmul.f32 0.01, %v2717_v24 }
 0xbba   :  { %v2691_v17 = vpop.xlane.xlu1 %2690 }
 0xbbb   :  { %v2730_v54 = vmax.f32 %v2714_v11, %v2722_v45  ;;  %v2733_v38 = vmax.f32 %v2717_v24, %v2725_v63  ;;  %v2716_v39 = vadd.f32 %v2922_v15, %v2691_v17  ;;  %v2697_v43 = vpop.xlane.xlu0 %2696 }
 0xbbc   :  { %v2718_v62 = vadd.f32 %v2922_v15, %v2697_v43 }
 0xbbd   :  { %2739 = vst.msk [vmem:[%s5088_s9] sm:$0xff] %vm2738_vm3, %v2730_v54  ;;  %2742 = vst.msk [vmem:[%s5088_s9 + $0x18] sm:$0xff] %vm2738_vm3, %v2733_v38  ;;  %v2724_v31 = vmul.f32 0.01, %v2716_v39 }
 0xbbe   :  { %v2726_v40 = vmul.f32 0.01, %v2718_v62  ;;  %v2700_v35 = vpop.xlane.xlu1 %2699 }
 0xbbf   :  { %v2732_v42 = vmax.f32 %v2716_v39, %v2724_v31  ;;  %v2719_v49 = vadd.f32 %v2922_v15, %v2700_v35  ;;  %v2703_v61 = vpop.xlane.xlu0 %2702 }
 0xbc0   :  { %v2734_v12 = vmax.f32 %v2718_v62, %v2726_v40  ;;  %v2720_v47 = vadd.f32 %v2922_v15, %v2703_v61 }
 0xbc1   :  { %2741 = vst.msk [vmem:[%s5088_s9 + $0x10] sm:$0xff] %vm2738_vm3, %v2732_v42  ;;  %v2727_v0 = vmul.f32 0.01, %v2719_v49 }
 0xbc2   :  { %2743 = vst.msk [vmem:[%s5088_s9 + $0x20] sm:$0xff] %vm2738_vm3, %v2734_v12  ;;  %v2728_v46 = vmul.f32 0.01, %v2720_v47  ;;  %v2706_v27 = vpop.xlane.xlu1 %2705 }
 0xbc3   :  { %v2735_v5 = vmax.f32 %v2719_v49, %v2727_v0  ;;  %v2721_v4 = vadd.f32 %v2922_v15, %v2706_v27 }
 0xbc4   :  { %v2736_v53 = vmax.f32 %v2720_v47, %v2728_v46 }
 0xbc5   :  { %2744 = vst.msk [vmem:[%s5088_s9 + $0x28] sm:$0xff] %vm2738_vm3, %v2735_v5  ;;  %v2729_v23 = vmul.f32 0.01, %v2721_v4 }
 0xbc6   :  { %2745 = vst.msk [vmem:[%s5088_s9 + $0x30] sm:$0xff] %vm2738_vm3, %v2736_v53 }
 0xbc7   :  { %v2737_v59 = vmax.f32 %v2721_v4, %v2729_v23 }
 0xbc9   :  { %2746 = vst.msk [vmem:[%s5088_s9 + $0x38] sm:$0xff] %vm2738_vm3, %v2737_v59 }
 0xbca   :  { %2751 = vsyncpa [#allocation4], 1 }
 0xbcb   :  { %2752 = vsyncpa [#allocation5], 1 }

</bundles_post_ra>
